<compile_context>
chip_gen: v5e
topology: v5e:2x2
jax: 0.10.0
libtpu: 0.0.40
codegen_flags: <defaults>
</compile_context>

<pallas_src>
import functools
import math

import jax
import jax.numpy as jnp
from jax.experimental import pallas as pl
from jax.experimental.pallas import tpu as pltpu


def mha_kernel(*refs, num_heads, dim_head, fused, has_mask, shared_mask,
               approx_recip):
    # Unpack refs according to the static configuration.
    i = 0
    if fused:
        x_ref = refs[0]
        i = 1
    else:
        q_ref, k_ref, v_ref = refs[0], refs[1], refs[2]
        i = 3
    if has_mask:
        mask_ref = refs[i]
        i += 1
    wqkv_ref, bqkv_ref, wo_ref, bo_ref, o_ref = (
        refs[i], refs[i + 1], refs[i + 2], refs[i + 3], refs[i + 4])

    H, dh = num_heads, dim_head
    Dout = H * dh
    if fused:
        Bb, S, Din = x_ref.shape
    else:
        Bb, S, Din = q_ref.shape
    cdt = wqkv_ref.dtype   # MXU operand dtype (bf16 fast path or f32)

    # ---- QKV projection: one wide (Bb*S, 3*Dout) matmul when self-attention ----
    if fused:
        x = x_ref[...].reshape(Bb * S, Din).astype(cdt)
        qkv = jnp.dot(x, wqkv_ref[...],
                      preferred_element_type=jnp.float32) + bqkv_ref[...]
        qp = qkv[:, 0:Dout]
        kp = qkv[:, Dout:2 * Dout]
        vp = qkv[:, 2 * Dout:3 * Dout]
    else:
        q = q_ref[...].reshape(Bb * S, Din).astype(cdt)
        k = k_ref[...].reshape(Bb * S, Din).astype(cdt)
        v = v_ref[...].reshape(Bb * S, Din).astype(cdt)
        qp = jnp.dot(q, wqkv_ref[:, 0:Dout],
                     preferred_element_type=jnp.float32) + bqkv_ref[:, 0:Dout]
        kp = jnp.dot(k, wqkv_ref[:, Dout:2 * Dout],
                     preferred_element_type=jnp.float32) + bqkv_ref[:, Dout:2 * Dout]
        vp = jnp.dot(v, wqkv_ref[:, 2 * Dout:3 * Dout],
                     preferred_element_type=jnp.float32) + bqkv_ref[:, 2 * Dout:3 * Dout]

    scale = 1.0 / math.sqrt(float(dh))

    # Head-major batched layout (Z = H*Bb, S, dh) built with leading-axis concat
    # (no 4-D transposes): z = h * Bb + b.
    def to_heads(t):
        t3 = t.reshape(Bb, S, Dout)
        return jnp.concatenate(
            [t3[:, :, h * dh:(h + 1) * dh] for h in range(H)], axis=0)

    qh = to_heads(qp * scale).astype(cdt)
    kh = to_heads(kp).astype(cdt)
    vh = to_heads(vp).astype(cdt)

    scores = jnp.einsum("zqd,zkd->zqk", qh, kh,
                        preferred_element_type=jnp.float32)

    if has_mask:
        if shared_mask:
            m = mask_ref[...] != 0                        # (S, S) int32
            scores = jnp.where(m[None, :, :], -1e9, scores)
        else:
            m = mask_ref[...].astype(jnp.int32) != 0      # (Bb, S, S) int8 -> bool
            m = jnp.tile(m, (H, 1, 1))                    # (H*Bb, S, S) head-major
            scores = jnp.where(m, -1e9, scores)

    # Softmax in f32; normalization deferred until after the PV matmul.
    scores = scores - jnp.max(scores, axis=-1, keepdims=True)
    p = jnp.exp(scores)
    denom = jnp.sum(p, axis=-1, keepdims=True)            # (Z, S, 1)

    oh = jnp.einsum("zqk,zkd->zqd", p.astype(cdt), vh,
                    preferred_element_type=jnp.float32)
    oh = oh * pl.reciprocal(denom, approx=approx_recip)

    # (H*Bb, S, dh) -> (Bb*S, Dout) concat, then ONE full-depth output projection.
    concat = jnp.concatenate(
        [oh[h * Bb:(h + 1) * Bb].reshape(Bb * S, dh) for h in range(H)], axis=-1)

    out = jnp.dot(concat.astype(cdt), wo_ref[...],
                  preferred_element_type=jnp.float32) + bo_ref[...]
    o_ref[...] = out.reshape(Bb, S, Din).astype(o_ref.dtype)


@functools.partial(
    jax.jit,
    static_argnames=("num_heads", "fused", "has_mask", "shared_mask",
                     "batch_block", "approx_recip"))
def _mha_call(query, key, value, mask, wqkv, bqkv, wo, bo, *,
              num_heads, fused, has_mask, shared_mask, batch_block, approx_recip):
    B, S, Din = query.shape
    Dout = wqkv.shape[1] // 3
    dh = Dout // num_heads
    nsteps = B // batch_block

    def batch_map(i):
        return (i, 0, 0)

    def resident(shape):
        # Constant index_map + single buffer: fetched once, stays in VMEM.
        return pl.BlockSpec(shape, lambda i: (0,) * len(shape),
                            pipeline_mode=pl.Buffered(1))

    in_specs = []
    inputs = []
    if fused:
        in_specs.append(pl.BlockSpec((batch_block, S, Din), batch_map))
        inputs.append(query)
    else:
        for t in (query, key, value):
            in_specs.append(pl.BlockSpec((batch_block, S, Din), batch_map))
            inputs.append(t)
    if has_mask:
        if shared_mask:
            in_specs.append(resident((S, S)))
        else:
            in_specs.append(pl.BlockSpec((batch_block, S, S), batch_map))
        inputs.append(mask)
    in_specs += [resident((Din, 3 * Dout)), resident((1, 3 * Dout)),
                 resident((Dout, Din)), resident((1, Din))]
    inputs += [wqkv, bqkv, wo, bo]

    # Advisory cost model (reflects fused QKV + resident / int8 mask traffic).
    flops = 8 * B * S * Din * Dout + 4 * B * S * S * Dout
    transcendentals = B * num_heads * S * (S + 1)
    w_item = jnp.dtype(wqkv.dtype).itemsize
    x_item = jnp.dtype(query.dtype).itemsize
    bytes_accessed = ((1 if fused else 3) * B * S * Din * x_item   # inputs
                      + B * S * Din * x_item                       # output
                      + (Din * 3 * Dout + Dout * Din) * w_item     # weights
                      + (3 * Dout + Din) * 4)                      # biases (f32)
    if has_mask:
        bytes_accessed += (S * S * 4) if shared_mask else (B * S * S * 1)
    cost = pl.CostEstimate(flops=flops, transcendentals=transcendentals,
                           bytes_accessed=bytes_accessed)

    kernel = functools.partial(
        mha_kernel, num_heads=num_heads, dim_head=dh, fused=fused,
        has_mask=has_mask, shared_mask=shared_mask, approx_recip=approx_recip)

    return pl.pallas_call(
        kernel,
        out_shape=jax.ShapeDtypeStruct((B, S, Din), query.dtype),
        grid_spec=pltpu.PrefetchScalarGridSpec(
            num_scalar_prefetch=0,
            grid=(nsteps,),
            in_specs=in_specs,
            out_specs=pl.BlockSpec((batch_block, S, Din), batch_map),
        ),
        compiler_params=pltpu.CompilerParams(
            dimension_semantics=("parallel",)),
        cost_estimate=cost,
    )(*inputs)


def mha_forward(query, key, value, mask, wq, bq, wk, bk, wv, bv, wo, bo, *,
                num_heads, compute_dtype=jnp.bfloat16, batch_block=None):
    """query/key/value: (B, S, Din); mask: None, (S, S) shared, or (B, S, S).

    wq/wk/wv: (Din, Dout) per-head-stacked; bq/bk/bv: (Dout,);
    wo: (Dout, Din); bo: (Din,).  Returns (B, S, Din).
    """
    B, S, Din = query.shape
    Dout = wq.shape[1]

    fused = (key is query) and (value is query)   # self-attention -> one wide QKV matmul
    has_mask = mask is not None
    shared_mask = has_mask and mask.ndim == 2     # (S, S) mask shared across batch

    if batch_block is None:
        # Whole batch per grid step: best for single-TensorCore v5e/v6e (per-step
        # overhead dominates at small shapes).  On v7x (2 TCs) prefer
        # batch_block = ceil(B / 2) so the "parallel" batch axis uses both cores.
        batch_block = B
    assert B % batch_block == 0, "batch must be divisible by batch_block"

    cdt = jnp.dtype(compute_dtype)
    wqkv = jnp.concatenate([wq, wk, wv], axis=1).astype(cdt)          # (Din, 3*Dout)
    bqkv = jnp.concatenate([bq, bk, bv], axis=0).reshape(1, 3 * Dout).astype(jnp.float32)
    wo_c = wo.astype(cdt)                                             # (Dout, Din)
    bo_c = bo.reshape(1, Din).astype(jnp.float32)

    mask_in = None
    if has_mask:
        # Shared (S, S) mask stays resident (one DMA total, int32 for safe layout);
        # a true per-batch (B, S, S) mask streams per step as int8 (4x less DMA).
        mask_in = mask.astype(jnp.int32 if shared_mask else jnp.int8)

    return _mha_call(query, key, value, mask_in, wqkv, bqkv, wo_c, bo_c,
                     num_heads=num_heads, fused=fused, has_mask=has_mask,
                     shared_mask=shared_mask, batch_block=batch_block,
                     approx_recip=bool(cdt == jnp.dtype(jnp.bfloat16)))


def init_params(key, num_heads, dim_in, dim_out, dtype=jnp.float32):
    """Synthetic init mirroring the torch module's uniform bounds."""
    dim_head = dim_out // num_heads
    ks = jax.random.split(key, 8)
    c_qkv = (6.0 / (dim_in + dim_head)) ** 0.5
    c_o = (6.0 / (dim_out + dim_in)) ** 0.5
    b_in = 1.0 / (dim_in ** 0.5)
    b_out = 1.0 / (dim_out ** 0.5)
    wq = jax.random.uniform(ks[0], (dim_in, dim_out), dtype, -c_qkv, c_qkv)
    wk = jax.random.uniform(ks[1], (dim_in, dim_out), dtype, -c_qkv, c_qkv)
    wv = jax.random.uniform(ks[2], (dim_in, dim_out), dtype, -c_qkv, c_qkv)
    bq = jax.random.uniform(ks[3], (dim_out,), dtype, -b_in, b_in)
    bk = jax.random.uniform(ks[4], (dim_out,), dtype, -b_in, b_in)
    bv = jax.random.uniform(ks[5], (dim_out,), dtype, -b_in, b_in)
    wo = jax.random.uniform(ks[6], (dim_out, dim_in), dtype, -c_o, c_o)
    bo = jax.random.uniform(ks[7], (dim_in,), dtype, -b_out, b_out)
    return wq, bq, wk, bk, wv, bv, wo, bo


def mha_reference(query, key, value, mask, wq, bq, wk, bk, wv, bv, wo, bo, *,
                  num_heads):
    """Pure-JAX reference matching the PyTorch forward."""
    hp = jax.lax.Precision.HIGHEST
    Dout = wq.shape[1]
    dh = Dout // num_heads
    qp = jnp.matmul(query, wq, precision=hp) + bq
    kp = jnp.matmul(key, wk, precision=hp) + bk
    vp = jnp.matmul(value, wv, precision=hp) + bv
    scale = 1.0 / jnp.sqrt(jnp.float32(dh))
    outs = []
    for h in range(num_heads):
        qh = qp[..., h * dh:(h + 1) * dh]
        kh = kp[..., h * dh:(h + 1) * dh]
        vh = vp[..., h * dh:(h + 1) * dh]
        s = jnp.einsum("bqd,bkd->bqk", qh, kh, precision=hp) * scale
        if mask is not None:
            s = jnp.where(mask, -1e9, s)
        p = jax.nn.softmax(s, axis=-1)
        outs.append(jnp.einsum("bqk,bkd->bqd", p, vh, precision=hp))
    concat = jnp.concatenate(outs, axis=-1)
    return jnp.matmul(concat, wo, precision=hp) + bo


if __name__ == "__main__":
    root = jax.random.PRNGKey(0)
    kx, kq, kk, kv, kparam = jax.random.split(root, 5)

    batch, seq, num_heads, dim_in, dim_out = 2, 16, 4, 128, 128
    params = init_params(kparam, num_heads, dim_in, dim_out)

    x = jax.random.normal(kx, (batch, seq, dim_in), jnp.float32)
    # Causal mask shared across the batch (True == masked out).
    causal = jnp.arange(seq)[None, :] > jnp.arange(seq)[:, None]     # (S, S)

    # 1) Self-attention + shared causal mask, f32 MXU path (tight check).
    out_f32 = jax.block_until_ready(
        mha_forward(x, x, x, causal, *params, num_heads=num_heads,
                    compute_dtype=jnp.float32))
    ref = mha_reference(x, x, x, causal, *params, num_heads=num_heads)
    assert out_f32.shape == (batch, seq, dim_in)
    err_f32 = float(jnp.max(jnp.abs(out_f32 - ref)))
    assert jnp.allclose(out_f32, ref, atol=2e-3, rtol=2e-3), f"f32 max err {err_f32}"

    # 2) Same, bf16 MXU operands (v6e/v7x fast path), f32 accumulate + softmax.
    out_bf16 = jax.block_until_ready(
        mha_forward(x, x, x, causal, *params, num_heads=num_heads,
                    compute_dtype=jnp.bfloat16))
    err_bf16 = float(jnp.max(jnp.abs(out_bf16 - ref)))
    assert jnp.allclose(out_bf16, ref, atol=0.15, rtol=0.05), f"bf16 max err {err_bf16}"

    # 3) Cross-attention (distinct q/k/v), no mask, f32 (separate-projection path).
    q = jax.random.normal(kq, (batch, seq, dim_in), jnp.float32)
    k = jax.random.normal(kk, (batch, seq, dim_in), jnp.float32)
    v = jax.random.normal(kv, (batch, seq, dim_in), jnp.float32)
    out_x = jax.block_until_ready(
        mha_forward(q, k, v, None, *params, num_heads=num_heads,
                    compute_dtype=jnp.float32))
    ref_x = mha_reference(q, k, v, None, *params, num_heads=num_heads)
    err_x = float(jnp.max(jnp.abs(out_x - ref_x)))
    assert jnp.allclose(out_x, ref_x, atol=2e-3, rtol=2e-3), f"cross max err {err_x}"

    print("KERNEL_OK")
</pallas_src>

<mosaic_0001>
module attributes {stable_mosaic.version = 11 : i64} {
  func.func @mha_kernel(%arg0: i32, %arg1: memref<2x16x128xf32, #tpu.memory_space<vmem>>, %arg2: memref<16x16xi32, #tpu.memory_space<vmem>>, %arg3: memref<128x384xf32, #tpu.memory_space<vmem>>, %arg4: memref<1x384xf32, #tpu.memory_space<vmem>>, %arg5: memref<128x128xf32, #tpu.memory_space<vmem>>, %arg6: memref<1x128xf32, #tpu.memory_space<vmem>>, %arg7: memref<2x16x128xf32, #tpu.memory_space<vmem>>) attributes {dimension_semantics = [#tpu.dimension_semantics<parallel>], iteration_bounds = array<i64: 1>, scalar_prefetch = 0 : i64, scratch_operands = 0 : i64, tpu.core_type = #tpu.core_type<tc>, window_params = [{transform_indices = @transform_0, window_bounds = array<i64: 2, 16, 128>}, {pipeline_mode = #tpu.pipeline_mode<synchronous>, transform_indices = @transform_1, window_bounds = array<i64: 16, 16>}, {pipeline_mode = #tpu.pipeline_mode<synchronous>, transform_indices = @transform_2, window_bounds = array<i64: 128, 384>}, {pipeline_mode = #tpu.pipeline_mode<synchronous>, transform_indices = @transform_3, window_bounds = array<i64: 1, 384>}, {pipeline_mode = #tpu.pipeline_mode<synchronous>, transform_indices = @transform_4, window_bounds = array<i64: 128, 128>}, {pipeline_mode = #tpu.pipeline_mode<synchronous>, transform_indices = @transform_5, window_bounds = array<i64: 1, 128>}, {transform_indices = @transform_6, window_bounds = array<i64: 2, 16, 128>}]} {
    %c0 = arith.constant 0 : index
    %c0_0 = arith.constant 0 : index
    %c0_1 = arith.constant 0 : index
    %0 = vector.load %arg1[%c0, %c0_0, %c0_1] : memref<2x16x128xf32, #tpu.memory_space<vmem>>, vector<2x16x128xf32>
    %1 = vector.shape_cast %0 : vector<2x16x128xf32> to vector<32x128xf32>
    %c0_2 = arith.constant 0 : index
    %c0_3 = arith.constant 0 : index
    %2 = vector.load %arg3[%c0_2, %c0_3] : memref<128x384xf32, #tpu.memory_space<vmem>>, vector<128x384xf32>
    %cst = arith.constant dense<0.000000e+00> : vector<32x384xf32>
    %3 = tpu.matmul %1, %2, %cst {dimension_numbers = #tpu.dot_dimension_numbers<[1], [0], [0], [1], [0, 0, 1, 1], [], []>} : vector<32x128xf32>, vector<128x384xf32>, vector<32x384xf32> -> vector<32x384xf32>
    %c0_4 = arith.constant 0 : index
    %c0_5 = arith.constant 0 : index
    %4 = vector.load %arg4[%c0_4, %c0_5] : memref<1x384xf32, #tpu.memory_space<vmem>>, vector<1x384xf32>
    %5 = vector.broadcast %4 : vector<1x384xf32> to vector<32x384xf32>
    %6 = arith.addf %3, %5 : vector<32x384xf32>
    %7 = vector.extract_strided_slice %6 {offsets = [0, 0], sizes = [32, 128], strides = [1, 1]} : vector<32x384xf32> to vector<32x128xf32>
    %8 = vector.extract_strided_slice %6 {offsets = [0, 128], sizes = [32, 128], strides = [1, 1]} : vector<32x384xf32> to vector<32x128xf32>
    %9 = vector.extract_strided_slice %6 {offsets = [0, 256], sizes = [32, 128], strides = [1, 1]} : vector<32x384xf32> to vector<32x128xf32>
    %cst_6 = arith.constant 0.176776692 : f32
    %10 = vector.broadcast %cst_6 : f32 to vector<32x128xf32>
    %11 = arith.mulf %7, %10 : vector<32x128xf32>
    %12 = vector.shape_cast %11 : vector<32x128xf32> to vector<2x16x128xf32>
    %13 = vector.extract_strided_slice %12 {offsets = [0, 0, 0], sizes = [2, 16, 32], strides = [1, 1, 1]} : vector<2x16x128xf32> to vector<2x16x32xf32>
    %14 = vector.extract_strided_slice %12 {offsets = [0, 0, 32], sizes = [2, 16, 32], strides = [1, 1, 1]} : vector<2x16x128xf32> to vector<2x16x32xf32>
    %15 = vector.extract_strided_slice %12 {offsets = [0, 0, 64], sizes = [2, 16, 32], strides = [1, 1, 1]} : vector<2x16x128xf32> to vector<2x16x32xf32>
    %16 = vector.extract_strided_slice %12 {offsets = [0, 0, 96], sizes = [2, 16, 32], strides = [1, 1, 1]} : vector<2x16x128xf32> to vector<2x16x32xf32>
    %17 = tpu.concatenate %13, %14, %15, %16 in 0 : vector<2x16x32xf32>, vector<2x16x32xf32>, vector<2x16x32xf32>, vector<2x16x32xf32> -> vector<8x16x32xf32>
    %18 = vector.shape_cast %8 : vector<32x128xf32> to vector<2x16x128xf32>
    %19 = vector.extract_strided_slice %18 {offsets = [0, 0, 0], sizes = [2, 16, 32], strides = [1, 1, 1]} : vector<2x16x128xf32> to vector<2x16x32xf32>
    %20 = vector.extract_strided_slice %18 {offsets = [0, 0, 32], sizes = [2, 16, 32], strides = [1, 1, 1]} : vector<2x16x128xf32> to vector<2x16x32xf32>
    %21 = vector.extract_strided_slice %18 {offsets = [0, 0, 64], sizes = [2, 16, 32], strides = [1, 1, 1]} : vector<2x16x128xf32> to vector<2x16x32xf32>
    %22 = vector.extract_strided_slice %18 {offsets = [0, 0, 96], sizes = [2, 16, 32], strides = [1, 1, 1]} : vector<2x16x128xf32> to vector<2x16x32xf32>
    %23 = tpu.concatenate %19, %20, %21, %22 in 0 : vector<2x16x32xf32>, vector<2x16x32xf32>, vector<2x16x32xf32>, vector<2x16x32xf32> -> vector<8x16x32xf32>
    %24 = vector.shape_cast %9 : vector<32x128xf32> to vector<2x16x128xf32>
    %25 = vector.extract_strided_slice %24 {offsets = [0, 0, 0], sizes = [2, 16, 32], strides = [1, 1, 1]} : vector<2x16x128xf32> to vector<2x16x32xf32>
    %26 = vector.extract_strided_slice %24 {offsets = [0, 0, 32], sizes = [2, 16, 32], strides = [1, 1, 1]} : vector<2x16x128xf32> to vector<2x16x32xf32>
    %27 = vector.extract_strided_slice %24 {offsets = [0, 0, 64], sizes = [2, 16, 32], strides = [1, 1, 1]} : vector<2x16x128xf32> to vector<2x16x32xf32>
    %28 = vector.extract_strided_slice %24 {offsets = [0, 0, 96], sizes = [2, 16, 32], strides = [1, 1, 1]} : vector<2x16x128xf32> to vector<2x16x32xf32>
    %29 = tpu.concatenate %25, %26, %27, %28 in 0 : vector<2x16x32xf32>, vector<2x16x32xf32>, vector<2x16x32xf32>, vector<2x16x32xf32> -> vector<8x16x32xf32>
    "tpu.trace_start"() <{level = 10 : i32, message = "zqd,zkd->zqk"}> : () -> ()
    %cst_7 = arith.constant dense<0.000000e+00> : vector<8x16x16xf32>
    %30 = tpu.matmul %17, %23, %cst_7 {dimension_numbers = #tpu.dot_dimension_numbers<[2], [2], [1], [1], [0, 0, 0, 1, 1, 1], [0], [0]>} : vector<8x16x32xf32>, vector<8x16x32xf32>, vector<8x16x16xf32> -> vector<8x16x16xf32>
    "tpu.trace_stop"() : () -> ()
    %c0_8 = arith.constant 0 : index
    %c0_9 = arith.constant 0 : index
    %31 = vector.load %arg2[%c0_8, %c0_9] : memref<16x16xi32, #tpu.memory_space<vmem>>, vector<16x16xi32>
    %c0_i32 = arith.constant 0 : i32
    %32 = vector.broadcast %c0_i32 : i32 to vector<16x16xi32>
    %33 = arith.cmpi ne, %31, %32 : vector<16x16xi32>
    %34 = vector.shape_cast %33 : vector<16x16xi1> to vector<1x16x16xi1>
    %cst_10 = arith.constant -1.000000e+09 : f32
    %35 = vector.shape_cast %34 : vector<1x16x16xi1> to vector<1x16x16xi1>
    %36 = vector.broadcast %35 : vector<1x16x16xi1> to vector<8x16x16xi1>
    %37 = vector.broadcast %cst_10 : f32 to vector<8x16x16xf32>
    %38 = arith.select %36, %37, %30 : vector<8x16x16xi1>, vector<8x16x16xf32>
    %cst_11 = arith.constant dense<0xFF800000> : vector<8x16xf32>
    %39 = vector.multi_reduction <maximumf>, %38, %cst_11 [2] : vector<8x16x16xf32> to vector<8x16xf32>
    %40 = vector.shape_cast %39 : vector<8x16xf32> to vector<8x16x1xf32>
    %41 = vector.broadcast %40 : vector<8x16x1xf32> to vector<8x16x16xf32>
    %42 = arith.subf %38, %41 : vector<8x16x16xf32>
    %43 = math.exp %42 : vector<8x16x16xf32>
    %cst_12 = arith.constant dense<0.000000e+00> : vector<8x16xf32>
    %44 = vector.multi_reduction <add>, %43, %cst_12 [2] : vector<8x16x16xf32> to vector<8x16xf32>
    %45 = vector.shape_cast %44 : vector<8x16xf32> to vector<8x16x1xf32>
    "tpu.trace_start"() <{level = 10 : i32, message = "zqk,zkd->zqd"}> : () -> ()
    %cst_13 = arith.constant dense<0.000000e+00> : vector<8x16x32xf32>
    %46 = tpu.matmul %43, %29, %cst_13 {dimension_numbers = #tpu.dot_dimension_numbers<[2], [1], [1], [2], [0, 0, 0, 1, 1, 2], [0], [0]>} : vector<8x16x16xf32>, vector<8x16x32xf32>, vector<8x16x32xf32> -> vector<8x16x32xf32>
    "tpu.trace_stop"() : () -> ()
    %47 = tpu.reciprocal %45 : vector<8x16x1xf32> -> vector<8x16x1xf32>
    %48 = vector.broadcast %47 : vector<8x16x1xf32> to vector<8x16x32xf32>
    %49 = arith.mulf %46, %48 : vector<8x16x32xf32>
    %50 = vector.extract_strided_slice %49 {offsets = [0, 0, 0], sizes = [2, 16, 32], strides = [1, 1, 1]} : vector<8x16x32xf32> to vector<2x16x32xf32>
    %51 = vector.shape_cast %50 : vector<2x16x32xf32> to vector<32x32xf32>
    %52 = vector.extract_strided_slice %49 {offsets = [2, 0, 0], sizes = [2, 16, 32], strides = [1, 1, 1]} : vector<8x16x32xf32> to vector<2x16x32xf32>
    %53 = vector.shape_cast %52 : vector<2x16x32xf32> to vector<32x32xf32>
    %54 = vector.extract_strided_slice %49 {offsets = [4, 0, 0], sizes = [2, 16, 32], strides = [1, 1, 1]} : vector<8x16x32xf32> to vector<2x16x32xf32>
    %55 = vector.shape_cast %54 : vector<2x16x32xf32> to vector<32x32xf32>
    %56 = vector.extract_strided_slice %49 {offsets = [6, 0, 0], sizes = [2, 16, 32], strides = [1, 1, 1]} : vector<8x16x32xf32> to vector<2x16x32xf32>
    %57 = vector.shape_cast %56 : vector<2x16x32xf32> to vector<32x32xf32>
    %58 = tpu.concatenate %51, %53, %55, %57 in 1 : vector<32x32xf32>, vector<32x32xf32>, vector<32x32xf32>, vector<32x32xf32> -> vector<32x128xf32>
    %c0_14 = arith.constant 0 : index
    %c0_15 = arith.constant 0 : index
    %59 = vector.load %arg5[%c0_14, %c0_15] : memref<128x128xf32, #tpu.memory_space<vmem>>, vector<128x128xf32>
    %cst_16 = arith.constant dense<0.000000e+00> : vector<32x128xf32>
    %60 = tpu.matmul %58, %59, %cst_16 {dimension_numbers = #tpu.dot_dimension_numbers<[1], [0], [0], [1], [0, 0, 1, 1], [], []>} : vector<32x128xf32>, vector<128x128xf32>, vector<32x128xf32> -> vector<32x128xf32>
    %c0_17 = arith.constant 0 : index
    %c0_18 = arith.constant 0 : index
    %61 = vector.load %arg6[%c0_17, %c0_18] : memref<1x128xf32, #tpu.memory_space<vmem>>, vector<1x128xf32>
    %62 = vector.broadcast %61 : vector<1x128xf32> to vector<32x128xf32>
    %63 = arith.addf %60, %62 : vector<32x128xf32>
    %64 = vector.shape_cast %63 : vector<32x128xf32> to vector<2x16x128xf32>
    %c0_19 = arith.constant 0 : index
    %c0_20 = arith.constant 0 : index
    %c0_21 = arith.constant 0 : index
    %65 = vector.load %arg7[%c0_19, %c0_20, %c0_21] : memref<2x16x128xf32, #tpu.memory_space<vmem>>, vector<2x16x128xf32>
    tpu.vector_store %arg7[%c0_19, %c0_20, %c0_21], %64 {strides = array<i32>} : memref<2x16x128xf32, #tpu.memory_space<vmem>>, vector<2x16x128xf32>,
    return
  }
  func.func @transform_0(%arg0: i32) -> (i32, i32, i32) {
    %c0_i32 = arith.constant 0 : i32
    %c0_i32_0 = arith.constant 0 : i32
    %c0_i32_1 = arith.constant 0 : i32
    return %arg0, %c0_i32, %c0_i32_0 : i32, i32, i32
  }
  func.func @transform_1(%arg0: i32) -> (i32, i32) {
    %c0_i32 = arith.constant 0 : i32
    %c0_i32_0 = arith.constant 0 : i32
    %c0_i32_1 = arith.constant 0 : i32
    return %c0_i32, %c0_i32_0 : i32, i32
  }
  func.func @transform_2(%arg0: i32) -> (i32, i32) {
    %c0_i32 = arith.constant 0 : i32
    %c0_i32_0 = arith.constant 0 : i32
    %c0_i32_1 = arith.constant 0 : i32
    return %c0_i32, %c0_i32_0 : i32, i32
  }
  func.func @transform_3(%arg0: i32) -> (i32, i32) {
    %c0_i32 = arith.constant 0 : i32
    %c0_i32_0 = arith.constant 0 : i32
    %c0_i32_1 = arith.constant 0 : i32
    return %c0_i32, %c0_i32_0 : i32, i32
  }
  func.func @transform_4(%arg0: i32) -> (i32, i32) {
    %c0_i32 = arith.constant 0 : i32
    %c0_i32_0 = arith.constant 0 : i32
    %c0_i32_1 = arith.constant 0 : i32
    return %c0_i32, %c0_i32_0 : i32, i32
  }
  func.func @transform_5(%arg0: i32) -> (i32, i32) {
    %c0_i32 = arith.constant 0 : i32
    %c0_i32_0 = arith.constant 0 : i32
    %c0_i32_1 = arith.constant 0 : i32
    return %c0_i32, %c0_i32_0 : i32, i32
  }
  func.func @transform_6(%arg0: i32) -> (i32, i32, i32) {
    %c0_i32 = arith.constant 0 : i32
    %c0_i32_0 = arith.constant 0 : i32
    %c0_i32_1 = arith.constant 0 : i32
    return %arg0, %c0_i32, %c0_i32_0 : i32, i32, i32
  }
}

</mosaic_0001>

<bundles_post_ra>
// kernel: _mha_call.1
= control target key start
LH: loop header
LB: loop body
LE: loop exit
PB: predicated region body
PF: predicated region fallthrough
CT: control target
= control target key end

     0   :  { %11 = vsyncpa [#allocation3], 0  ;;  %s2171_s0 = inlined_call_operand.hbm [shape: f32[2,16,128], index: 0, kind: input, shape index: {}]   ;;  %s2172_s1 = inlined_call_operand.hbm [shape: s32[16,16], index: 1, kind: input, shape index: {}]   ;;  %s2173_s2 = inlined_call_operand.hbm [shape: f32[128,384], index: 2, kind: input, shape index: {}]   ;;  %s2174_s3 = inlined_call_operand.hbm [shape: f32[1,384], index: 3, kind: input, shape index: {}]   ;;  %s2175_s4 = inlined_call_operand.hbm [shape: f32[128,128], index: 4, kind: input, shape index: {}]   ;;  %s2176_s5 = inlined_call_operand.vmem [shape: f32[1,128], index: 5, kind: input, shape index: {}]   ;;  %s2177_s6 = inlined_call_operand.hbm [shape: f32[2,16,128], index: 6, kind: output, shape index: {}]  }
   0x1   :  { %12 = vsyncpa [#allocation6], 0 }
   0x2   :  { %13 = vsyncpa [#allocation9], 0 }
   0x3   :  { %14 = vsyncpa [#allocation4], 0  ;;  %s32_s23 = sshll.u32 %s2172_s1, 4  ;;  %s1688_s24 = smov [#allocation5]   ;;  %s33_s23 = int_to_ptr.hbm [resolvable:$true] %s32_s23 }
   0x4   :  { %s34_s25 = sshll.u32 %s1688_s24, 4  ;;  %s59_s28 = sshll.u32 %s2174_s3, 4  ;;  %s35_s25 = int_to_ptr.vmem [resolvable:$true] %s34_s25  ;;  %s60_s28 = int_to_ptr.hbm [resolvable:$true] %s59_s28 }
   0x5   :  { %s1689_s29 = smov 128   ;;  %s1690_s30 = smov 8  }
   0x6   :  { %40 = dma.hbm_to_vmem [thread:$0]  %s33_s23, 256, %s35_s25, [#allocation6], %s1689_s29, %s1689_s29, %s1690_s30  }
   0x7   :  { %s1691_s7 = smov [#allocation8]   ;;  %s19_s1 = sshll.u32 %s2171_s0, 4  ;;  %s20_s1 = int_to_ptr.hbm [resolvable:$true] %s19_s1 }
   0x8   :  { %s61_s8 = sshll.u32 %s1691_s7, 4  ;;  %s45_s3 = sshll.u32 %s2173_s2, 4  ;;  %s62_s8 = int_to_ptr.vmem [resolvable:$true] %s61_s8  ;;  %s46_s3 = int_to_ptr.hbm [resolvable:$true] %s45_s3 }
   0x9   :  { %64 = dma.hbm_to_vmem [thread:$0]  %s60_s28, 48, %s62_s8, [#allocation9]  }
   0xa   :  { %s1692_s13 = smov [#allocation2]   ;;  %s1693_s15 = smov [#allocation7]  }
   0xb   :  { %s21_s14 = sshll.u32 %s1692_s13, 4  ;;  %s47_s16 = sshll.u32 %s1693_s15, 4  ;;  %s22_s14 = int_to_ptr.vmem [resolvable:$true] %s21_s14  ;;  %s48_s16 = int_to_ptr.vmem [resolvable:$true] %s47_s16 }
   0xc   :  { %27 = dma.hbm_to_vmem [thread:$0]  %s20_s1, 512, %s22_s14, [#allocation3], %s1689_s29, %s1689_s29, %s1690_s30  }
   0xd   :  { %s1694_s17 = smov 384   ;;  %s1695_s0 = smov 24  }
   0xe   :  { %53 = dma.hbm_to_vmem [thread:$0]  %s46_s3, 6144, %s48_s16, [#allocation6], %s1694_s17, %s1694_s17, %s1695_s0  }
   0xf   :  { %s69_s20 = sshll.u32 %s2175_s4, 4  ;;  %s1696_s2 = smov [#allocation10]   ;;  %s70_s20 = int_to_ptr.hbm [resolvable:$true] %s69_s20 }
  0x10   :  { %s71_s21 = sshll.u32 %s1696_s2, 4  ;;  %s72_s21 = int_to_ptr.vmem [resolvable:$true] %s71_s21 }
  0x11   :  { %77 = dma.hbm_to_vmem [thread:$0]  %s70_s20, 2048, %s72_s21, [#allocation9], %s1689_s29, %s1689_s29, %s1690_s30  }
  0x12   :  { %1680 = dma.done.wait [#allocation3], 512  }
  0x13   :  { %1681 = vsyncadd [#allocation3], 4294966784 }
  0x14   :  { %1682 = dma.done.wait [#allocation6], 6400  }
  0x15   :  { %1683 = vsyncadd [#allocation6], 4294960896 }
  0x16   :  { %1684 = dma.done.wait [#allocation9], 2096  }
  0x17   :  { %1685 = vsyncadd [#allocation9], 4294965200  ;;  %v149_v0 = vld [vmem:[#allocation7 + $0x168] sm:$0xff]  ;;  %v146_v1 = vld [vmem:[#allocation7 + $0x150] sm:$0xff]  ;;  %s1697_s4 = smov 96   ;;  %s1698_s22 = smov 32  }
  0x18   :  { %160 = vmatpush.msra.mxu1 %v149_v0  ;;  %v143_v2 = vld [vmem:[#allocation7 + $0x138] sm:$0xff]  ;;  %v140_v3 = vld [vmem:[#allocation7 + $0x120] sm:$0xff]  ;;  %v137_v4 = vld [vmem:[#allocation7 + $0x108] sm:$0xff]  ;;  %vm347_vm0 = vcmask 261120   ;;  %s1699_s23 = smov 64   ;;  %vm620_vm2 = vcmask 130048  }
  0x19   :  { %v134_v5 = vld [vmem:[#allocation7 + $0xf0] sm:$0xff]  ;;  %v131_v6 = vld [vmem:[#allocation7 + $0xd8] sm:$0xff]  ;;  %v128_v7 = vld [vmem:[#allocation7 + $0xc0] sm:$0xff]  ;;  %s1700_s26 = smov [#allocation11]   ;;  %s1358_s8 = sshll.u32 %s2177_s6, 4  ;;  %s1359_s8 = int_to_ptr.hbm [resolvable:$true] %s1358_s8 }
  0x1a   :  { %161 = vmatpush.msra.mxu1 %v146_v1  ;;  %v125_v8 = vld [vmem:[#allocation7 + $0xa8] sm:$0xff]  ;;  %v122_v9 = vld [vmem:[#allocation7 + $0x90] sm:$0xff]  ;;  %v119_v10 = vld [vmem:[#allocation7 + $0x78] sm:$0xff]  ;;  %s1356_s27 = sshll.u32 %s1700_s26, 4  ;;  %s1357_s27 = int_to_ptr.vmem [resolvable:$true] %s1356_s27 }
  0x1b   :  { %v116_v11 = vld [vmem:[#allocation7 + $0x60] sm:$0xff]  ;;  %v113_v12 = vld [vmem:[#allocation7 + $0x48] sm:$0xff]  ;;  %v110_v13 = vld [vmem:[#allocation7 + $0x30] sm:$0xff] }
  0x1c   :  { %162 = vmatpush.msra.mxu1 %v143_v2  ;;  %v107_v14 = vld [vmem:[#allocation7 + $0x18] sm:$0xff]  ;;  %v104_v15 = vld [vmem:[#allocation7] sm:$0xff]  ;;  %v1760_v16 = vld [vmem:[#allocation2] sm:$0xff] }
  0x1d   :  { %v150_v17 = vld [vmem:[#allocation7 + $0x170] sm:$0xff]  ;;  %v147_v18 = vld [vmem:[#allocation7 + $0x158] sm:$0xff]  ;;  %v144_v19 = vld [vmem:[#allocation7 + $0x140] sm:$0xff] }
  0x1e   :  { %163 = vmatpush.msra.mxu1 %v140_v3  ;;  %v141_v20 = vld [vmem:[#allocation7 + $0x128] sm:$0xff]  ;;  %v1763_v21 = vld [vmem:[#allocation2 + $0x8] sm:$0xff]  ;;  %v138_v22 = vld [vmem:[#allocation7 + $0x110] sm:$0xff] }
  0x1f   :  { %v135_v23 = vld [vmem:[#allocation7 + $0xf8] sm:$0xff]  ;;  %v132_v24 = vld [vmem:[#allocation7 + $0xe0] sm:$0xff]  ;;  %v129_v25 = vld [vmem:[#allocation7 + $0xc8] sm:$0xff] }
  0x20   :  { %164 = vmatpush.msra.mxu1 %v137_v4  ;;  %v102_v26 = vld [vmem:[#allocation2 + $0x10] sm:$0xff]  ;;  %v126_v27 = vld [vmem:[#allocation7 + $0xb0] sm:$0xff]  ;;  %v123_v28 = vld [vmem:[#allocation7 + $0x98] sm:$0xff] }
  0x21   :  { %v120_v29 = vld [vmem:[#allocation7 + $0x80] sm:$0xff]  ;;  %v117_v30 = vld [vmem:[#allocation7 + $0x68] sm:$0xff]  ;;  %v114_v32 = vld [vmem:[#allocation7 + $0x50] sm:$0xff] }
  0x22   :  { %165 = vmatpush.msra.mxu1 %v134_v5  ;;  %v103_v31 = vld [vmem:[#allocation2 + $0x18] sm:$0xff]  ;;  %v111_v33 = vld [vmem:[#allocation7 + $0x38] sm:$0xff]  ;;  %v148_v35 = vld [vmem:[#allocation7 + $0x160] sm:$0xff] }
  0x23   :  { %v151_v34 = vld [vmem:[#allocation7 + $0x178] sm:$0xff]  ;;  %v108_v36 = vld [vmem:[#allocation7 + $0x20] sm:$0xff]  ;;  %v145_v37 = vld [vmem:[#allocation7 + $0x148] sm:$0xff] }
  0x24   :  { %166 = vmatpush.msra.mxu1 %v131_v6  ;;  %218 = vmatpush.msra.mxu2 %v151_v34  ;;  %v105_v38 = vld [vmem:[#allocation7 + $0x8] sm:$0xff]  ;;  %v142_v39 = vld [vmem:[#allocation7 + $0x130] sm:$0xff]  ;;  %v139_v40 = vld [vmem:[#allocation7 + $0x118] sm:$0xff] }
  0x25   :  { %v136_v41 = vld [vmem:[#allocation7 + $0x100] sm:$0xff]  ;;  %v133_v42 = vld [vmem:[#allocation7 + $0xe8] sm:$0xff]  ;;  %v130_v43 = vld [vmem:[#allocation7 + $0xd0] sm:$0xff] }
  0x26   :  { %167 = vmatpush.msra.mxu1 %v128_v7  ;;  %219 = vmatpush.msra.mxu2 %v148_v35  ;;  %v127_v44 = vld [vmem:[#allocation7 + $0xb8] sm:$0xff]  ;;  %v124_v45 = vld [vmem:[#allocation7 + $0xa0] sm:$0xff]  ;;  %v121_v46 = vld [vmem:[#allocation7 + $0x88] sm:$0xff] }
  0x27   :  { %v118_v47 = vld [vmem:[#allocation7 + $0x70] sm:$0xff]  ;;  %v115_v48 = vld [vmem:[#allocation7 + $0x58] sm:$0xff]  ;;  %v112_v49 = vld [vmem:[#allocation7 + $0x40] sm:$0xff] }
  0x28   :  { %168 = vmatpush.msra.mxu1 %v125_v8  ;;  %220 = vmatpush.msra.mxu2 %v145_v37  ;;  %v109_v50 = vld [vmem:[#allocation7 + $0x28] sm:$0xff]  ;;  %v106_v51 = vld [vmem:[#allocation7 + $0x10] sm:$0xff]  ;;  %v152_v52 = vld [vmem:[#allocation8] sm:$0x7] }
  0x29   :  { %v154_v53 = vperm.slane %v152_v52, 0  ;;  %v155_v0 = vperm.slane %v152_v52, 1 }
  0x2a   :  { %169 = vmatpush.msra.mxu1 %v122_v9  ;;  %221 = vmatpush.msra.mxu2 %v142_v39 }
  0x2c   :  { %170 = vmatpush.msra.mxu1 %v119_v10  ;;  %222 = vmatpush.msra.mxu2 %v139_v40 }
  0x2e   :  { %171 = vmatpush.msra.mxu1 %v116_v11  ;;  %223 = vmatpush.msra.mxu2 %v136_v41 }
  0x30   :  { %172 = vmatpush.msra.mxu1 %v113_v12  ;;  %224 = vmatpush.msra.mxu2 %v133_v42 }
  0x32   :  { %173 = vmatpush.msra.mxu1 %v110_v13  ;;  %225 = vmatpush.msra.mxu2 %v130_v43 }
  0x34   :  { %174 = vmatpush.msra.mxu1 %v107_v14  ;;  %226 = vmatpush.msra.mxu2 %v127_v44  ;;  %v156_v14 = vperm.slane %v152_v52, 2 }
  0x36   :  { %175 = vmatpush.msra.mxu1 %v104_v15  ;;  %227 = vmatpush.msra.mxu2 %v124_v45  ;;  %v1840_v45 = vld [vmem:[#allocation5 + $0x8] sm:$0xff] }
  0x37   :  { %176 = vmatmul.f32.vlgmr.msra.gmra.mxu1 %v1760_v16  ;;  %vm599_vm3 = vcmp.ne.s32.totalorder %v1840_v45, 0 }
  0x38   :  { %189 = vmatpush.msrb.mxu1 %v150_v17  ;;  %228 = vmatpush.msra.mxu2 %v121_v46 }
  0x3a   :  { %190 = vmatpush.msrb.mxu1 %v147_v18  ;;  %229 = vmatpush.msra.mxu2 %v118_v47 }
  0x3c   :  { %191 = vmatpush.msrb.mxu1 %v144_v19  ;;  %230 = vmatpush.msra.mxu2 %v115_v48 }
  0x3e   :  { %192 = vmatpush.msrb.mxu1 %v141_v20  ;;  %231 = vmatpush.msra.mxu2 %v112_v49 }
  0x3f   :  { %179 = vmatmul.f32.gmra.mxu1 %v1763_v21 }
  0x40   :  { %193 = vmatpush.msrb.mxu1 %v138_v22  ;;  %232 = vmatpush.msra.mxu2 %v109_v50 }
  0x42   :  { %194 = vmatpush.msrb.mxu1 %v135_v23  ;;  %233 = vmatpush.msra.mxu2 %v106_v51 }
  0x43   :  { %234 = vmatmul.f32.vlgmr.msra.gmra.mxu2 %v1760_v16 }
  0x44   :  { %195 = vmatpush.msrb.mxu1 %v132_v24 }
  0x46   :  { %196 = vmatpush.msrb.mxu1 %v129_v25 }
  0x47   :  { %182 = vmatmul.f32.gmra.mxu1 %v102_v26 }
  0x48   :  { %197 = vmatpush.msrb.mxu1 %v126_v27 }
  0x4a   :  { %198 = vmatpush.msrb.mxu1 %v123_v28 }
  0x4b   :  { %237 = vmatmul.f32.gmra.mxu2 %v1763_v21 }
  0x4c   :  { %199 = vmatpush.msrb.mxu1 %v120_v29 }
  0x4e   :  { %200 = vmatpush.msrb.mxu1 %v117_v30 }
  0x4f   :  { %185 = vmatmul.f32.gmra.mxu1 %v103_v31 }
  0x50   :  { %201 = vmatpush.msrb.mxu1 %v114_v32 }
  0x52   :  { %202 = vmatpush.msrb.mxu1 %v111_v33 }
  0x53   :  { %240 = vmatmul.f32.gmra.mxu2 %v102_v26 }
  0x54   :  { %203 = vmatpush.msrb.mxu1 %v108_v36 }
  0x56   :  { %204 = vmatpush.msrb.mxu1 %v105_v38  ;;  %v1830_v38 = vld [vmem:[#allocation5] sm:$0xff] }
  0x57   :  { %205 = vmatmul.f32.vlgmr.msrb.gmra.mxu1 %v1760_v16  ;;  %vm598_vm1 = vcmp.ne.s32.totalorder %v1830_v38, 0 }
  0x5b   :  { %243 = vmatmul.f32.gmra.mxu2 %v103_v31 }
  0x5f   :  { %208 = vmatmul.f32.gmra.mxu1 %v1763_v21 }
  0x67   :  { %211 = vmatmul.f32.gmra.mxu1 %v102_v26 }
  0x6f   :  { %214 = vmatmul.f32.gmra.mxu1 %v103_v31 }
  0xb4   :  { %v177_v54 = vpop.f32.mrf.mxu1 }
  0xb5   :  { %v178_v55 = vadd.f32 %v177_v54, %v154_v53 }
  0xb7   :  { %v247_v56 = vmul.f32 0.17677669, %v178_v55 }
  0xb9   :  { %255 = vrot.lane.b32.xlu1 %v247_v56, %s1697_s4 }
  0xbc   :  { %v180_v57 = vpop.f32.mrf.mxu1 }
  0xbd   :  { %v181_v58 = vadd.f32 %v180_v57, %v154_v53 }
  0xbf   :  { %v248_v59 = vmul.f32 0.17677669, %v181_v58 }
  0xc1   :  { %257 = vrot.lane.b32.xlu1 %v248_v59, %s1697_s4 }
  0xc4   :  { %v183_v60 = vpop.f32.mrf.mxu1 }
  0xc5   :  { %v184_v61 = vadd.f32 %v183_v60, %v154_v53 }
  0xc6   :  { %v235_v11 = vpop.f32.mrf.mxu2 }
  0xc7   :  { %v249_v62 = vmul.f32 0.17677669, %v184_v61  ;;  %v1806_v19 = vadd.f32 %v235_v11, %v156_v14 }
  0xc9   :  { %259 = vrot.lane.b32.xlu2 %v249_v62, %s1697_s4 }
  0xcc   :  { %v186_v63 = vpop.f32.mrf.mxu1 }
  0xcd   :  { %v187_v9 = vadd.f32 %v186_v63, %v154_v53 }
  0xce   :  { %v238_v12 = vpop.f32.mrf.mxu2 }
  0xcf   :  { %v250_v10 = vmul.f32 0.17677669, %v187_v9  ;;  %v1808_v20 = vadd.f32 %v238_v12, %v156_v14 }
  0xd1   :  { %v1812_v21 = vpack.i.bf16 %v1806_v19, %v1808_v20 }
  0xd4   :  { %v206_v1 = vpop.f32.mrf.mxu1 }
  0xd5   :  { %v207_v2 = vadd.f32 %v206_v1, %v155_v0 }
  0xd6   :  { %v241_v13 = vpop.f32.mrf.mxu2 }
  0xd7   :  { %283 = vrot.lane.b32.xlu0 %v207_v2, %s1697_s4  ;;  %299 = vrot.lane.b32.xlu1 %v207_v2, %s1698_s22  ;;  %v242_v15 = vadd.f32 %v241_v13, %v156_v14 }
  0xdc   :  { %v209_v3 = vpop.f32.mrf.mxu1 }
  0xdd   :  { %v210_v4 = vadd.f32 %v209_v3, %v155_v0 }
  0xde   :  { %v244_v16 = vpop.f32.mrf.mxu2 }
  0xdf   :  { %1373 = vmatpush.xpose.msk.msra.mxu3 %vm347_vm0, %v210_v4  ;;  %285 = vrot.lane.b32.xlu0 %v210_v4, %s1697_s4  ;;  %v245_v17 = vadd.f32 %v244_v16, %v156_v14 }
  0xe0   :  { %301 = vrot.lane.b32.xlu2 %v210_v4, %s1698_s22  ;;  %293 = vrot.lane.b32.xlu1 %v210_v4, %s1699_s23 }
  0xe1   :  { %v1802_v18 = vpack.i.bf16 %v242_v15, %v245_v17  ;;  %814 = vmatpush.msra.mxu1 %v245_v17 }
  0xe3   :  { %1374 = vmatpush.xpose.msk.msra.mxu3 %vm347_vm0, %v207_v2  ;;  %815 = vmatpush.msra.mxu1 %v242_v15 }
  0xe4   :  { %v212_v5 = vpop.f32.mrf.mxu1 }
  0xe5   :  { %v213_v6 = vadd.f32 %v212_v5, %v155_v0 }
  0xe6   :  { %1375 = vmatmul.msk.f32.vlgmr.msra.gmra.mxu3 %vm347_vm0, %v247_v56 }
  0xe7   :  { %271 = vrot.lane.b32.xlu0 %v247_v56, %s1698_s22 }
  0xe8   :  { %291 = vrot.lane.b32.xlu1 %v207_v2, %s1699_s23 }
  0xec   :  { %v215_v7 = vpop.f32.mrf.mxu1 }
  0xed   :  { %v216_v8 = vadd.f32 %v215_v7, %v155_v0 }
  0xee   :  { %1376 = vmatmul.msk.f32.gmra.mxu3 %vm347_vm0, %v248_v59 }
  0xef   :  { %1377 = vmatpush.xpose.msk.msrb.mxu3 %vm347_vm0, %v216_v8  ;;  %289 = vrot.lane.b32.xlu2 %v216_v8, %s1697_s4 }
  0xf0   :  { %287 = vrot.lane.b32.xlu0 %v213_v6, %s1697_s4  ;;  %303 = vrot.lane.b32.xlu1 %v213_v6, %s1698_s22 }
  0xf3   :  { %1378 = vmatpush.xpose.msk.msrb.mxu3 %vm347_vm0, %v213_v6 }
  0xf6   :  { %1379 = vmatmul.msk.f32.vlgmr.msrb.gmra.mxu3 %vm347_vm0, %v249_v62 }
  0xf7   :  { %261 = vrot.lane.b32.xlu2 %v250_v10, %s1697_s4 }
  0xf8   :  { %273 = vrot.lane.b32.xlu0 %v248_v59, %s1698_s22  ;;  %297 = vrot.lane.b32.xlu1 %v216_v8, %s1699_s23 }
  0xfe   :  { %1380 = vmatmul.msk.f32.gmra.mxu3 %vm347_vm0, %v250_v10 }
  0xff   :  { %305 = vrot.lane.b32.xlu2 %v216_v8, %s1698_s22 }
 0x100   :  { %263 = vrot.lane.b32.xlu0 %v247_v56, %s1699_s23  ;;  %267 = vrot.lane.b32.xlu1 %v249_v62, %s1699_s23 }
 0x107   :  { %275 = vrot.lane.b32.xlu2 %v249_v62, %s1698_s22 }
 0x108   :  { %265 = vrot.lane.b32.xlu0 %v248_v59, %s1699_s23  ;;  %1447 = vrot.lane.b32.xlu1 %v1812_v21, %s1698_s22 }
 0x10f   :  { %277 = vrot.lane.b32.xlu2 %v250_v10, %s1698_s22 }
 0x110   :  { %295 = vrot.lane.b32.xlu0 %v213_v6, %s1699_s23 }
 0x117   :  { %269 = vrot.lane.b32.xlu2 %v250_v10, %s1699_s23 }
 0x118   :  { %1437 = vrot.lane.b32.xlu0 %v1812_v21, %s1697_s4 }
 0x11f   :  { %1442 = vrot.lane.b32.xlu2 %v1802_v18, %s1697_s4 }
 0x123   :  { %v260_v22 = vpop.permute.xlu2 %259 }
 0x12b   :  { %v256_v23 = vpop.permute.xlu1 %255 }
 0x133   :  { %v258_v25 = vpop.permute.xlu1 %257 }
 0x13a   :  { %v302_v24 = vpop.permute.xlu2 %301 }
 0x13b   :  { %1397 = vmatpush.xpose.msk.msrb.mxu2 %vm347_vm0, %v302_v24 }
 0x149   :  { %v284_v26 = vpop.permute.xlu0 %283  ;;  %v290_v27 = vpop.permute.xlu2 %289 }
 0x14a   :  { %v300_v28 = vpop.permute.xlu1 %299 }
 0x14b   :  { %1398 = vmatpush.xpose.msk.msrb.mxu2 %vm347_vm0, %v300_v28 }
 0x14f   :  { %1421 = vmatpush.msra.mxu2 %v245_v17 }
 0x151   :  { %1422 = vmatpush.msra.mxu2 %v242_v15  ;;  %v286_v29 = vpop.permute.xlu0 %285  ;;  %v262_v30 = vpop.permute.xlu2 %261 }
 0x152   :  { %v294_v31 = vpop.permute.xlu1 %293  ;;  %1381 = vmatpush.xpose.msk.msra.mxu3 %vm347_vm0, %v286_v29 }
 0x153   :  { %1389 = vmatpush.xpose.msk.msra.mxu0 %vm347_vm0, %v294_v31 }
 0x156   :  { %1382 = vmatpush.xpose.msk.msra.mxu3 %vm347_vm0, %v284_v26 }
 0x159   :  { %v306_v32 = vpop.permute.xlu2 %305  ;;  %v272_v33 = vpop.permute.xlu0 %271  ;;  %1383 = vmatmul.msk.f32.vlgmr.msra.gmra.mxu3 %vm347_vm0, %v256_v23 }
 0x15a   :  { %1385 = vmatpush.xpose.msk.msrb.mxu3 %vm347_vm0, %v290_v27  ;;  %v292_v34 = vpop.permute.xlu1 %291  ;;  %1399 = vmatmul.msk.f32.vlgmr.msrb.gmra.mxu2 %vm347_vm0, %v272_v33 }
 0x15b   :  { %1390 = vmatpush.xpose.msk.msra.mxu0 %vm347_vm0, %v292_v34 }
 0x161   :  { %v276_v35 = vpop.permute.xlu2 %275  ;;  %1384 = vmatmul.msk.f32.gmra.mxu3 %vm347_vm0, %v258_v25 }
 0x162   :  { %v288_v36 = vpop.permute.xlu0 %287  ;;  %v304_v37 = vpop.permute.xlu1 %303 }
 0x163   :  { %1386 = vmatpush.xpose.msk.msrb.mxu3 %vm347_vm0, %v288_v36 }
 0x167   :  { %1401 = vmatpush.xpose.msk.msra.mxu3 %vm347_vm0, %v306_v32 }
 0x169   :  { %v278_v39 = vpop.permute.xlu2 %277  ;;  %v373_v40 = vpop.f32.mrf.mxu3  ;;  %1387 = vmatmul.msk.f32.vlgmr.msrb.gmra.mxu3 %vm347_vm0, %v260_v22 }
 0x16a   :  { %v274_v41 = vpop.permute.xlu0 %273  ;;  %v298_v42 = vpop.permute.xlu1 %297  ;;  %v604_v43 = vsel %vm598_vm1, -1e+09, %v373_v40 }
 0x16b   :  { %1402 = vmatpush.xpose.msk.msra.mxu3 %vm347_vm0, %v304_v37  ;;  %1400 = vmatmul.msk.f32.gmra.mxu2 %vm347_vm0, %v274_v41  ;;  %v621_v44 = vsel %vm620_vm2, %v604_v43, -inf }
 0x16c   :  { %1393 = vmatpush.xpose.msk.msrb.mxu0 %vm347_vm0, %v298_v42  ;;  %622 = vmax.xlane.f32.xlu2 %v621_v44 }
 0x171   :  { %v376_v46 = vpop.f32.mrf.mxu3  ;;  %1388 = vmatmul.msk.f32.gmra.mxu3 %vm347_vm0, %v262_v30  ;;  %v270_v47 = vpop.permute.xlu2 %269 }
 0x172   :  { %v264_v48 = vpop.permute.xlu0 %263  ;;  %v605_v49 = vsel %vm599_vm3, -1e+09, %v376_v46  ;;  %v268_v62 = vpop.permute.xlu1 %267 }
 0x173   :  { %1391 = vmatmul.msk.f32.vlgmr.msra.gmra.mxu0 %vm347_vm0, %v264_v48  ;;  %v624_v50 = vsel %vm620_vm2, %v605_v49, -inf }
 0x174   :  { %625 = vmax.xlane.f32.xlu1 %v624_v50 }
 0x179   :  { %v404_v51 = vpop.f32.mrf.mxu3  ;;  %1403 = vmatmul.msk.f32.vlgmr.msra.gmra.mxu3 %vm347_vm0, %v276_v35  ;;  %v1443_v54 = vpop.permute.xlu2 %1442 }
 0x17a   :  { %v266_v52 = vpop.permute.xlu0 %265  ;;  %v606_v53 = vsel %vm598_vm1, -1e+09, %v404_v51  ;;  %v1445_v56 = vunpack.i.h.bf16 %v1443_v54  ;;  %v1444_v57 = vunpack.i.l.bf16 %v1443_v54  ;;  %v1868_v4 = vpop.permute.xlu1 %1447 }
 0x17b   :  { %1392 = vmatmul.msk.f32.gmra.mxu0 %vm347_vm0, %v266_v52  ;;  %v627_v55 = vsel %vm620_vm2, %v606_v53, -inf  ;;  %v1449_v46 = vunpack.i.l.bf16 %v1868_v4  ;;  %v1450_v50 = vunpack.i.h.bf16 %v1868_v4 }
 0x17c   :  { %628 = vmax.xlane.f32.xlu2 %v627_v55  ;;  %872 = vmatpush.msrb.mxu3 %v1444_v57 }
 0x17e   :  { %873 = vmatpush.msrb.mxu3 %v1445_v56 }
 0x181   :  { %v407_v58 = vpop.f32.mrf.mxu3  ;;  %1404 = vmatmul.msk.f32.gmra.mxu3 %vm347_vm0, %v278_v39 }
 0x182   :  { %v296_v59 = vpop.permute.xlu0 %295  ;;  %v607_v60 = vsel %vm599_vm3, -1e+09, %v407_v58 }
 0x183   :  { %1394 = vmatpush.xpose.msk.msrb.mxu0 %vm347_vm0, %v296_v59  ;;  %v630_v61 = vsel %vm620_vm2, %v607_v60, -inf }
 0x184   :  { %631 = vmax.xlane.f32.xlu0 %v630_v61 }
 0x186   :  { %1395 = vmatmul.msk.f32.vlgmr.msrb.gmra.mxu0 %vm347_vm0, %v268_v62 }
 0x187   :  { %785 = vmatpush.msra.mxu0 %v1808_v20 }
 0x189   :  { %786 = vmatpush.msra.mxu0 %v1806_v19 }
 0x18a   :  { %v1438_v63 = vpop.permute.xlu0 %1437 }
 0x18b   :  { %v1440_v0 = vunpack.i.h.bf16 %v1438_v63  ;;  %v1439_v1 = vunpack.i.l.bf16 %v1438_v63 }
 0x18d   :  { %843 = vmatpush.msrb.mxu2 %v1439_v1 }
 0x18e   :  { %1396 = vmatmul.msk.f32.gmra.mxu0 %vm347_vm0, %v270_v47 }
 0x18f   :  { %844 = vmatpush.msrb.mxu2 %v1440_v0 }
 0x198   :  { %1452 = vrot.lane.b32.xlu0 %v1812_v21, %s1699_s23 }
 0x1dc   :  { %v435_v2 = vpop.f32.mrf.mxu3 }
 0x1dd   :  { %v1866_v3 = vsel %vm598_vm1, -1e+09, %v435_v2  ;;  %v559_v7 = vpop.f32.mrf.mxu2 }
 0x1de   :  { %v633_v5 = vsel %vm620_vm2, %v1866_v3, -inf  ;;  %v1874_v10 = vsel %vm598_vm1, -1e+09, %v559_v7 }
 0x1df   :  { %v623_v6 = vpop.xlane.xlu2 %622  ;;  %634 = vmax.xlane.f32.xlu1 %v633_v5  ;;  %v657_v12 = vsel %vm620_vm2, %v1874_v10, -inf }
 0x1e0   :  { %v669_v8 = vsub.f32 %v604_v43, %v623_v6 }
 0x1e2   :  { %v685_v9 = vmul.f32 1.442695, %v669_v8 }
 0x1e4   :  { %1472 = vpow2.f32 %v685_v9  ;;  %v438_v11 = vpop.f32.mrf.mxu3 }
 0x1e5   :  { %v1897_v30 = vsel %vm599_vm3, -1e+09, %v438_v11 }
 0x1e6   :  { %v636_v39 = vsel %vm620_vm2, %v1897_v30, -inf }
 0x1e7   :  { %v626_v13 = vpop.xlane.xlu1 %625  ;;  %658 = vmax.xlane.f32.xlu1 %v657_v12 }
 0x1e8   :  { %v670_v14 = vsub.f32 %v605_v49, %v626_v13 }
 0x1ea   :  { %v1878_v15 = vpop.eup %1472  ;;  %v687_v16 = vmul.f32 1.442695, %v670_v14 }
 0x1eb   :  { %1405 = vmatmul.msk.f32.vlgmr.msra.gmra.mxu0 %vm620_vm2, %v1878_v15  ;;  %v717_v63 = vsel %vm620_vm2, %v1878_v15, 0.0 }
 0x1ec   :  { %1474 = vpow2.f32 %v687_v16  ;;  %v466_v17 = vpop.f32.mrf.mxu3 }
 0x1ed   :  { %v1916_v43 = vsel %vm598_vm1, -1e+09, %v466_v17 }
 0x1ee   :  { %v562_v19 = vpop.f32.mrf.mxu2  ;;  %v639_v48 = vsel %vm620_vm2, %v1916_v43, -inf }
 0x1ef   :  { %v1884_v20 = vsel %vm599_vm3, -1e+09, %v562_v19  ;;  %v629_v21 = vpop.xlane.xlu2 %628 }
 0x1f0   :  { %v497_v22 = vpop.f32.mrf.mxu0  ;;  %v671_v23 = vsub.f32 %v606_v53, %v629_v21  ;;  %v660_v24 = vsel %vm620_vm2, %v1884_v20, -inf }
 0x1f1   :  { %v1890_v25 = vsel %vm598_vm1, -1e+09, %v497_v22  ;;  %661 = vmax.xlane.f32.xlu0 %v660_v24 }
 0x1f2   :  { %v1475_v26 = vpop.eup %1474  ;;  %v689_v27 = vmul.f32 1.442695, %v671_v23  ;;  %v645_v28 = vsel %vm620_vm2, %v1890_v25, -inf }
 0x1f3   :  { %646 = vmax.xlane.f32.xlu2 %v645_v28  ;;  %1406 = vmatmul.msk.f32.gmra.mxu0 %vm620_vm2, %v1475_v26  ;;  %v720_v52 = vsel %vm620_vm2, %v1475_v26, 0.0 }
 0x1f4   :  { %1476 = vpow2.f32 %v689_v27  ;;  %v469_v29 = vpop.f32.mrf.mxu3 }
 0x1f5   :  { %v1920_v44 = vsel %vm599_vm3, -1e+09, %v469_v29 }
 0x1f6   :  { %v642_v49 = vsel %vm620_vm2, %v1920_v44, -inf }
 0x1f7   :  { %v632_v31 = vpop.xlane.xlu0 %631 }
 0x1f8   :  { %v500_v32 = vpop.f32.mrf.mxu0  ;;  %v672_v33 = vsub.f32 %v607_v60, %v632_v31 }
 0x1f9   :  { %v1901_v34 = vsel %vm599_vm3, -1e+09, %v500_v32 }
 0x1fa   :  { %v1477_v35 = vpop.eup %1476  ;;  %v691_v36 = vmul.f32 1.442695, %v672_v33  ;;  %v648_v37 = vsel %vm620_vm2, %v1901_v34, -inf }
 0x1fb   :  { %649 = vmax.xlane.f32.xlu1 %v648_v37  ;;  %637 = vmax.xlane.f32.xlu2 %v636_v39  ;;  %v723_v2 = vsel %vm620_vm2, %v1477_v35, 0.0 }
 0x1fc   :  { %1478 = vpow2.f32 %v691_v36  ;;  %1407 = vmatmul.msk.f32.vlgmr.msra.gmra.mxu1 %vm620_vm2, %v1477_v35  ;;  %v590_v40 = vpop.f32.mrf.mxu3 }
 0x1fd   :  { %v1910_v41 = vsel %vm598_vm1, -1e+09, %v590_v40 }
 0x1fe   :  { %v663_v42 = vsel %vm620_vm2, %v1910_v41, -inf }
 0x1ff   :  { %664 = vmax.xlane.f32.xlu0 %v663_v42 }
 0x202   :  { %v1923_v47 = vpop.eup %1478 }
 0x203   :  { %v528_v51 = vpop.f32.mrf.mxu0  ;;  %640 = vmax.xlane.f32.xlu2 %v639_v48  ;;  %643 = vmax.xlane.f32.xlu1 %v642_v49 }
 0x204   :  { %1408 = vmatmul.msk.f32.vlgmr.msra.gmra.mxu2 %vm620_vm2, %v1923_v47  ;;  %v1935_v53 = vsel %vm598_vm1, -1e+09, %v528_v51  ;;  %v593_v38 = vpop.f32.mrf.mxu3 }
 0x205   :  { %959 = vmatpush.msra.mxu2 %v1449_v46  ;;  %v651_v54 = vsel %vm620_vm2, %v1935_v53, -inf  ;;  %v1947_v61 = vsel %vm599_vm3, -1e+09, %v593_v38 }
 0x206   :  { %v666_v62 = vsel %vm620_vm2, %v1947_v61, -inf }
 0x207   :  { %721 = vadd.xlane.f32.xlu0 %v720_v52  ;;  %960 = vmatpush.msra.mxu2 %v1450_v50 }
 0x20a   :  { %v1453_v55 = vpop.permute.xlu0 %1452 }
 0x20b   :  { %v531_v56 = vpop.f32.mrf.mxu0  ;;  %652 = vmax.xlane.f32.xlu2 %v651_v54  ;;  %v1455_v57 = vunpack.i.h.bf16 %v1453_v55  ;;  %v1454_v58 = vunpack.i.l.bf16 %v1453_v55 }
 0x20c   :  { %v1941_v59 = vsel %vm599_vm3, -1e+09, %v531_v56 }
 0x20d   :  { %v654_v60 = vsel %vm620_vm2, %v1941_v59, -inf  ;;  %901 = vmatpush.msrb.mxu0 %v1454_v58 }
 0x20e   :  { %655 = vmax.xlane.f32.xlu1 %v654_v60 }
 0x20f   :  { %902 = vmatpush.msrb.mxu0 %v1455_v57 }
 0x216   :  { %667 = vmax.xlane.f32.xlu1 %v666_v62 }
 0x223   :  { %1457 = vrot.lane.b32.xlu2 %v1802_v18, %s1698_s22 }
 0x22f   :  { %1462 = vrot.lane.b32.xlu1 %v1802_v18, %s1699_s23 }
 0x24c   :  { %718 = vadd.xlane.f32.xlu2 %v717_v63 }
 0x252   :  { %v635_v0 = vpop.xlane.xlu1 %634 }
 0x253   :  { %v673_v1 = vsub.f32 %v1866_v3, %v635_v0 }
 0x255   :  { %v693_v45 = vmul.f32 1.442695, %v673_v1 }
 0x257   :  { %1480 = vpow2.f32 %v693_v45 }
 0x259   :  { %724 = vadd.xlane.f32.xlu1 %v723_v2 }
 0x25a   :  { %v659_v6 = vpop.xlane.xlu1 %658 }
 0x25b   :  { %v681_v8 = vsub.f32 %v1874_v10, %v659_v6 }
 0x25d   :  { %v1481_v4 = vpop.eup %1480  ;;  %v709_v3 = vmul.f32 1.442695, %v681_v8 }
 0x25e   :  { %1409 = vmatmul.msk.f32.vlgmr.msrb.gmra.mxu2 %vm620_vm2, %v1481_v4  ;;  %v729_v5 = vsel %vm620_vm2, %v1481_v4, 0.0 }
 0x25f   :  { %730 = vadd.xlane.f32.xlu2 %v729_v5 }
 0x264   :  { %v662_v10 = vpop.xlane.xlu0 %661 }
 0x265   :  { %v682_v26 = vsub.f32 %v1884_v20, %v662_v10 }
 0x266   :  { %v647_v18 = vpop.xlane.xlu2 %646 }
 0x267   :  { %v677_v7 = vsub.f32 %v1890_v25, %v647_v18  ;;  %v711_v32 = vmul.f32 1.442695, %v682_v26 }
 0x268   :  { %v1998_v18 = vpop.f32.mrf.mxu0 }
 0x269   :  { %v701_v9 = vmul.f32 1.442695, %v677_v7 }
 0x26b   :  { %1482 = vpow2.f32 %v701_v9 }
 0x26c   :  { %1484 = vpow2.f32 %v709_v3 }
 0x26e   :  { %v650_v11 = vpop.xlane.xlu1 %649  ;;  %v638_v12 = vpop.xlane.xlu2 %637 }
 0x26f   :  { %v678_v13 = vsub.f32 %v1901_v34, %v650_v11  ;;  %v674_v14 = vsub.f32 %v1897_v30, %v638_v12 }
 0x271   :  { %v1483_v15 = vpop.eup %1482  ;;  %v703_v16 = vmul.f32 1.442695, %v678_v13  ;;  %v695_v17 = vmul.f32 1.442695, %v674_v14  ;;  %v2004_v14 = vpop.f32.mrf.mxu0 }
 0x272   :  { %1413 = vmatmul.msk.f32.vlgmr.msrb.gmra.mxu0 %vm620_vm2, %v1483_v15  ;;  %v741_v19 = vsel %vm620_vm2, %v1483_v15, 0.0  ;;  %v1485_v22 = vpop.eup %1484  ;;  %v665_v35 = vpop.xlane.xlu0 %664 }
 0x273   :  { %1486 = vpow2.f32 %v703_v16  ;;  %742 = vadd.xlane.f32.xlu0 %v741_v19  ;;  %v753_v30 = vsel %vm620_vm2, %v1485_v22, 0.0  ;;  %v683_v42 = vsub.f32 %v1910_v41, %v665_v35 }
 0x274   :  { %1488 = vpow2.f32 %v695_v17 }
 0x275   :  { %v713_v46 = vmul.f32 1.442695, %v683_v42 }
 0x276   :  { %v641_v21 = vpop.xlane.xlu2 %640  ;;  %v644_v24 = vpop.xlane.xlu1 %643 }
 0x277   :  { %v675_v23 = vsub.f32 %v1916_v43, %v641_v21  ;;  %v676_v29 = vsub.f32 %v1920_v44, %v644_v24 }
 0x279   :  { %v1487_v25 = vpop.eup %1486  ;;  %v697_v27 = vmul.f32 1.442695, %v675_v23  ;;  %v699_v33 = vmul.f32 1.442695, %v676_v29 }
 0x27a   :  { %v1489_v28 = vpop.eup %1488  ;;  %1414 = vmatmul.msk.f32.gmra.mxu0 %vm620_vm2, %v1487_v25  ;;  %v744_v40 = vsel %vm620_vm2, %v1487_v25, 0.0  ;;  %v1996_v5 = vpop.xlane.xlu0 %721 }
 0x27b   :  { %1490 = vpow2.f32 %v697_v27  ;;  %1410 = vmatmul.msk.f32.gmra.mxu2 %vm620_vm2, %v1489_v28  ;;  %754 = vadd.xlane.f32.xlu0 %v753_v30  ;;  %v732_v31 = vsel %vm620_vm2, %v1489_v28, 0.0 }
 0x27c   :  { %733 = vadd.xlane.f32.xlu1 %v732_v31  ;;  %1492 = vpow2.f32 %v711_v32 }
 0x27d   :  { %1494 = vpow2.f32 %v699_v33 }
 0x27e   :  { %v653_v34 = vpop.xlane.xlu2 %652 }
 0x27f   :  { %v679_v20 = vsub.f32 %v1935_v53, %v653_v34 }
 0x281   :  { %v1491_v36 = vpop.eup %1490  ;;  %v705_v37 = vmul.f32 1.442695, %v679_v20  ;;  %v656_v39 = vpop.xlane.xlu1 %655 }
 0x282   :  { %1411 = vmatmul.msk.f32.vlgmr.msrb.gmra.mxu3 %vm620_vm2, %v1491_v36  ;;  %v1493_v44 = vpop.eup %1492  ;;  %v680_v52 = vsub.f32 %v1941_v59, %v656_v39  ;;  %v735_v60 = vsel %vm620_vm2, %v1491_v36, 0.0 }
 0x283   :  { %1496 = vpow2.f32 %v705_v37  ;;  %1417 = vmatmul.msk.f32.vlgmr.msra.gmra.mxu2 %vm620_vm2, %v1485_v22  ;;  %745 = vadd.xlane.f32.xlu0 %v744_v40  ;;  %v1495_v49 = vpop.eup %1494  ;;  %v756_v55 = vsel %vm620_vm2, %v1493_v44, 0.0 }
 0x284   :  { %1498 = vpow2.f32 %v713_v46  ;;  %v707_v57 = vmul.f32 1.442695, %v680_v52  ;;  %v738_v59 = vsel %vm620_vm2, %v1495_v49, 0.0 }
 0x286   :  { %v1458_v43 = vpop.permute.xlu2 %1457 }
 0x287   :  { %v1459_v48 = vunpack.i.l.bf16 %v1458_v43  ;;  %v1460_v53 = vunpack.i.h.bf16 %v1458_v43  ;;  %v2006_v19 = vpop.f32.mrf.mxu2 }
 0x289   :  { %v1497_v50 = vpop.eup %1496  ;;  %988 = vmatpush.msra.mxu3 %v1459_v48  ;;  %v668_v51 = vpop.xlane.xlu1 %667 }
 0x28a   :  { %v684_v54 = vsub.f32 %v1947_v61, %v668_v51  ;;  %1412 = vmatmul.msk.f32.gmra.mxu3 %vm620_vm2, %v1495_v49  ;;  %v747_v41 = vsel %vm620_vm2, %v1497_v50, 0.0  ;;  %v1499_v58 = vpop.eup %1498 }
 0x28b   :  { %1418 = vmatmul.msk.f32.gmra.mxu2 %vm620_vm2, %v1493_v44  ;;  %748 = vadd.xlane.f32.xlu2 %v747_v41  ;;  %v759_v45 = vsel %vm620_vm2, %v1499_v58, 0.0 }
 0x28c   :  { %v715_v56 = vmul.f32 1.442695, %v684_v54  ;;  %989 = vmatpush.msra.mxu3 %v1460_v53  ;;  %757 = vadd.xlane.f32.xlu0 %v756_v55 }
 0x28e   :  { %1500 = vpow2.f32 %v715_v56 }
 0x28f   :  { %1502 = vpow2.f32 %v707_v57 }
 0x292   :  { %1419 = vmatmul.msk.f32.vlgmr.msra.gmra.mxu3 %vm620_vm2, %v1499_v58 }
 0x293   :  { %739 = vadd.xlane.f32.xlu2 %v738_v59 }
 0x294   :  { %v1501_v38 = vpop.eup %1500  ;;  %736 = vadd.xlane.f32.xlu0 %v735_v60 }
 0x295   :  { %v762_v61 = vsel %vm620_vm2, %v1501_v38, 0.0  ;;  %v1503_v62 = vpop.eup %1502 }
 0x296   :  { %763 = vadd.xlane.f32.xlu1 %v762_v61  ;;  %v750_v63 = vsel %vm620_vm2, %v1503_v62, 0.0 }
 0x29a   :  { %1420 = vmatmul.msk.f32.gmra.mxu3 %vm620_vm2, %v1501_v38 }
 0x29c   :  { %751 = vadd.xlane.f32.xlu0 %v750_v63 }
 0x2a1   :  { %v1463_v0 = vpop.permute.xlu1 %1462 }
 0x2a2   :  { %v1464_v1 = vunpack.i.l.bf16 %v1463_v0  ;;  %v1465_v2 = vunpack.i.h.bf16 %v1463_v0 }
 0x2a4   :  { %760 = vadd.xlane.f32.xlu0 %v759_v45  ;;  %930 = vmatpush.msrb.mxu1 %v1464_v1 }
 0x2a6   :  { %931 = vmatpush.msrb.mxu1 %v1465_v2 }
 0x2a7   :  { %1415 = vmatmul.msk.f32.vlgmr.msrb.gmra.mxu1 %vm620_vm2, %v1497_v50 }
 0x2af   :  { %1416 = vmatmul.msk.f32.gmra.mxu1 %vm620_vm2, %v1503_v62 }
 0x2bf   :  { %v1994_v4 = vpop.xlane.xlu2 %718 }
 0x2cc   :  { %v2000_v8 = vpop.xlane.xlu1 %724 }
 0x2d2   :  { %v731_v6 = vpop.xlane.xlu2 %730 }
 0x2d3   :  { %1504 = vrcp.f32 %v731_v6  ;;  %v1064_v20 = vand.u32 2147483648, %v731_v6  ;;  %vm1058_vm9 = vweird.f32 %v731_v6  ;;  %v1062_v35 = vand.u32 2147483647, %v731_v6 }
 0x2d5   :  { %v1065_v44 = vor.u32 1.1754944e-38, %v1064_v20  ;;  %vm1063_vm12 = vcmp.eq.f32.partialorder %v1062_v35, 8.507059e+37 }
 0x2d9   :  { %v1505_v9 = vpop.eup %1504 }
 0x2da   :  { %v1054_v3 = vmul.f32 %v1505_v9, %v731_v6  ;;  %vm1059_vm8 = vweird.f32 %v1505_v9 }
 0x2db   :  { %vm1060_vm10 = vmor %vm1058_vm9, %vm1059_vm8 }
 0x2dc   :  { %v1055_v15 = vsub.f32 1.0, %v1054_v3 }
 0x2de   :  { %v1056_v23 = vmul.f32 %v1505_v9, %v1055_v15 }
 0x2e0   :  { %v1057_v31 = vadd.f32 %v1505_v9, %v1056_v23 }
 0x2e1   :  { %v846_v34 = vpop.f32.mrf.mxu2 }
 0x2e2   :  { %v1061_v39 = vsel %vm1060_vm10, %v1505_v9, %v1057_v31 }
 0x2e3   :  { %v1066_v49 = vsel %vm1063_vm12, %v1065_v44, %v1061_v39 }
 0x2e4   :  { %v1225_v55 = vmul.f32 %v1066_v49, %v846_v34  ;;  %v2036_v34 = vpop.f32.mrf.mxu1 }
 0x2e6   :  { %v743_v7 = vpop.xlane.xlu0 %742 }
 0x2e7   :  { %1506 = vrcp.f32 %v743_v7  ;;  %v1120_v10 = vand.u32 2147483648, %v743_v7  ;;  %v1118_v22 = vand.u32 2147483647, %v743_v7  ;;  %vm1114_vm5 = vweird.f32 %v743_v7 }
 0x2e9   :  { %v1121_v25 = vor.u32 1.1754944e-38, %v1120_v10  ;;  %vm1119_vm7 = vcmp.eq.f32.partialorder %v1118_v22, 8.507059e+37 }
 0x2ed   :  { %v1507_v11 = vpop.eup %1506 }
 0x2ee   :  { %v1110_v12 = vmul.f32 %v1507_v11, %v743_v7  ;;  %v2002_v13 = vpop.xlane.xlu0 %754  ;;  %vm1115_vm4 = vweird.f32 %v1507_v11 }
 0x2ef   :  { %v734_v17 = vpop.xlane.xlu1 %733  ;;  %vm1116_vm6 = vmor %vm1114_vm5, %vm1115_vm4  ;;  %v904_v29 = vpop.f32.mrf.mxu0 }
 0x2f0   :  { %v1111_v16 = vsub.f32 1.0, %v1110_v12  ;;  %1508 = vrcp.f32 %v734_v17  ;;  %v1078_v37 = vand.u32 2147483648, %v734_v17  ;;  %v1076_v42 = vand.u32 2147483647, %v734_v17 }
 0x2f1   :  { %vm1072_vm13 = vweird.f32 %v734_v17 }
 0x2f2   :  { %v1112_v21 = vmul.f32 %v1507_v11, %v1111_v16  ;;  %v1079_v50 = vor.u32 1.1754944e-38, %v1078_v37  ;;  %vm1077_vm15 = vcmp.eq.f32.partialorder %v1076_v42, 8.507059e+37 }
 0x2f4   :  { %v1113_v24 = vadd.f32 %v1507_v11, %v1112_v21 }
 0x2f6   :  { %v1117_v26 = vsel %vm1116_vm6, %v1507_v11, %v1113_v24  ;;  %v746_v27 = vpop.xlane.xlu0 %745  ;;  %v1509_v28 = vpop.eup %1508 }
 0x2f7   :  { %v1122_v30 = vsel %vm1119_vm7, %v1121_v25, %v1117_v26  ;;  %1510 = vrcp.f32 %v746_v27  ;;  %v1068_v32 = vmul.f32 %v1509_v28, %v734_v17  ;;  %vm1073_vm11 = vweird.f32 %v1509_v28  ;;  %v907_v45 = vpop.f32.mrf.mxu0 }
 0x2f8   :  { %v1229_v33 = vmul.f32 %v1122_v30, %v904_v29  ;;  %vm1074_vm14 = vmor %vm1072_vm13, %vm1073_vm11  ;;  %v1134_v58 = vand.u32 2147483648, %v746_v27  ;;  %vm1128_vm3 = vweird.f32 %v746_v27  ;;  %v1132_v60 = vand.u32 2147483647, %v746_v27 }
 0x2f9   :  { %v1069_v36 = vsub.f32 1.0, %v1068_v32 }
 0x2fa   :  { %1257 = vrot.lane.b32.xlu0 %v1229_v33, %s1699_s23  ;;  %v1135_v63 = vor.u32 1.1754944e-38, %v1134_v58  ;;  %vm1133_vm5 = vcmp.eq.f32.partialorder %v1132_v60, 8.507059e+37 }
 0x2fb   :  { %v1070_v40 = vmul.f32 %v1509_v28, %v1069_v36 }
 0x2fd   :  { %v1511_v43 = vpop.eup %1510  ;;  %v1071_v48 = vadd.f32 %v1509_v28, %v1070_v40 }
 0x2fe   :  { %v1124_v46 = vmul.f32 %v1511_v43, %v746_v27  ;;  %v849_v54 = vpop.f32.mrf.mxu2  ;;  %vm1129_vm1 = vweird.f32 %v1511_v43  ;;  %v2011_v61 = vpop.xlane.xlu2 %748 }
 0x2ff   :  { %v2009_v51 = vpop.xlane.xlu0 %757  ;;  %v1075_v53 = vsel %vm1074_vm14, %v1509_v28, %v1071_v48  ;;  %vm1130_vm4 = vmor %vm1128_vm3, %vm1129_vm1  ;;  %1512 = vrcp.f32 %v2011_v61  ;;  %v1146_v40 = vand.u32 2147483647, %v2011_v61  ;;  %v1148_v42 = vand.u32 2147483648, %v2011_v61 }
 0x300   :  { %v1125_v52 = vsub.f32 1.0, %v1124_v46  ;;  %v1080_v41 = vsel %vm1077_vm15, %v1079_v50, %v1075_v53  ;;  %vm1142_vm11 = vweird.f32 %v2011_v61 }
 0x301   :  { %v1226_v57 = vmul.f32 %v1080_v41, %v849_v54  ;;  %v726_v54 = vsel %vm620_vm2, %v1923_v47, 0.0  ;;  %vm1147_vm13 = vcmp.eq.f32.partialorder %v1146_v40, 8.507059e+37  ;;  %v1149_v41 = vor.u32 1.1754944e-38, %v1148_v42 }
 0x302   :  { %v1126_v56 = vmul.f32 %v1511_v43, %v1125_v52  ;;  %vm1170_vm2 = vweird.f32 %v2002_v13 }
 0x303   :  { %v1466_v38 = vpack.i.bf16 %v1226_v57, %v1225_v55 }
 0x304   :  { %v1127_v59 = vadd.f32 %v1511_v43, %v1126_v56 }
 0x305   :  { %1467 = vrot.lane.b32.xlu2 %v1466_v38, %s1698_s22  ;;  %v2015_v6 = vpop.eup %1512  ;;  %v875_v17 = vpop.f32.mrf.mxu3 }
 0x306   :  { %v1131_v62 = vsel %vm1130_vm4, %v1511_v43, %v1127_v59  ;;  %v1138_v11 = vmul.f32 %v2015_v6, %v2011_v61  ;;  %v2032_v32 = vpop.xlane.xlu2 %739  ;;  %vm1143_vm10 = vweird.f32 %v2015_v6 }
 0x307   :  { %v737_v0 = vpop.xlane.xlu0 %736  ;;  %v1136_v1 = vsel %vm1133_vm5, %v1135_v63, %v1131_v62  ;;  %vm2052_vm12 = vmor %vm1142_vm11, %vm1143_vm10  ;;  %vm1184_vm11 = vweird.f32 %v2009_v51  ;;  %v1104_v48 = vand.u32 2147483647, %v2032_v32 }
 0x308   :  { %1514 = vrcp.f32 %v737_v0  ;;  %v1230_v2 = vmul.f32 %v1136_v1, %v907_v45  ;;  %v1092_v16 = vand.u32 2147483648, %v737_v0  ;;  %v1090_v10 = vand.u32 2147483647, %v737_v0 }
 0x309   :  { %1516 = vrcp.f32 %v2002_v13  ;;  %v1139_v22 = vsub.f32 1.0, %v1138_v11  ;;  %vm1086_vm7 = vweird.f32 %v737_v0  ;;  %v2065_v61 = vpop.xlane.xlu1 %763  ;;  %v1176_v1 = vand.u32 2147483648, %v2002_v13 }
 0x30a   :  { %v1093_v24 = vor.u32 1.1754944e-38, %v1092_v16  ;;  %vm1091_vm9 = vcmp.eq.f32.partialorder %v1090_v10, 8.507059e+37 }
 0x30b   :  { %v1140_v29 = vmul.f32 %v2015_v6, %v1139_v22  ;;  %v1177_v10 = vor.u32 1.1754944e-38, %v1176_v1  ;;  %v1308_v1 = vld [vmem:[#allocation10 + $0x48] sm:$0xff] }
 0x30d   :  { %1259 = vrot.lane.b32.xlu2 %v1230_v2, %s1699_s23  ;;  %v1141_v36 = vadd.f32 %v2015_v6, %v1140_v29  ;;  %v2044_v39 = vpop.f32.mrf.mxu3 }
 0x30e   :  { %v1515_v7 = vpop.eup %1514 }
 0x30f   :  { %v1082_v9 = vmul.f32 %v1515_v7, %v737_v0  ;;  %v2019_v3 = vpop.xlane.xlu0 %751  ;;  %vm1087_vm6 = vweird.f32 %v1515_v7  ;;  %v2024_v21 = vpop.eup %1516  ;;  %v1145_v52 = vsel %vm2052_vm12, %v2015_v6, %v1141_v36  ;;  %v1174_v0 = vand.u32 2147483647, %v2002_v13 }
 0x310   :  { %1518 = vrcp.f32 %v2019_v3  ;;  %vm1088_vm8 = vmor %vm1086_vm7, %vm1087_vm6  ;;  %v1166_v27 = vmul.f32 %v2024_v21, %v2002_v13  ;;  %vm1171_vm15 = vweird.f32 %v2024_v21  ;;  %v1150_v38 = vsel %vm1147_vm13, %v1149_v41, %v1145_v52 }
 0x311   :  { %v1083_v12 = vsub.f32 1.0, %v1082_v9  ;;  %1520 = vrcp.f32 %v2009_v51  ;;  %vm2078_vm5 = vmor %vm1170_vm2, %vm1171_vm15  ;;  %vm1175_vm7 = vcmp.eq.f32.partialorder %v1174_v0, 8.507059e+37  ;;  %v1162_v22 = vand.u32 2147483648, %v2019_v3  ;;  %v1310_v0 = vld [vmem:[#allocation10 + $0x58] sm:$0xff]  ;;  %v1303_v9 = vld [vmem:[#allocation10 + $0x20] sm:$0xff] }
 0x312   :  { %v1167_v20 = vsub.f32 1.0, %v1166_v27 }
 0x313   :  { %v1084_v15 = vmul.f32 %v1515_v7, %v1083_v12 }
 0x314   :  { %v1168_v46 = vmul.f32 %v2024_v21, %v1167_v20 }
 0x315   :  { %v1085_v23 = vadd.f32 %v1515_v7, %v1084_v15  ;;  %v991_v13 = vpop.f32.mrf.mxu3 }
 0x316   :  { %v2030_v30 = vpop.eup %1518  ;;  %v1169_v59 = vadd.f32 %v2024_v21, %v1168_v46 }
 0x317   :  { %v761_v25 = vpop.xlane.xlu0 %760  ;;  %v1089_v26 = vsel %vm1088_vm8, %v1515_v7, %v1085_v23  ;;  %v2034_v33 = vpop.eup %1520  ;;  %v1152_v35 = vmul.f32 %v2030_v30, %v2019_v3  ;;  %vm1157_vm6 = vweird.f32 %v2030_v30 }
 0x318   :  { %1522 = vrcp.f32 %v761_v25  ;;  %v1094_v28 = vsel %vm1091_vm9, %v1093_v24, %v1089_v26  ;;  %v1180_v43 = vmul.f32 %v2034_v33, %v2009_v51  ;;  %v1204_v53 = vand.u32 2147483648, %v761_v25 }
 0x319   :  { %v1227_v31 = vmul.f32 %v1094_v28, %v875_v17  ;;  %1524 = vrcp.f32 %v2032_v32  ;;  %v1153_v49 = vsub.f32 1.0, %v1152_v35  ;;  %v1202_v57 = vand.u32 2147483647, %v761_v25  ;;  %v962_v17 = vpop.f32.mrf.mxu2 }
 0x31a   :  { %v1181_v55 = vsub.f32 1.0, %v1180_v43  ;;  %vm1198_vm1 = vweird.f32 %v761_v25  ;;  %v1205_v45 = vor.u32 1.1754944e-38, %v1204_v53  ;;  %1526 = vrcp.f32 %v2065_v61 }
 0x31b   :  { %1245 = vrot.lane.b32.xlu2 %v1227_v31, %s1698_s22  ;;  %v1154_v63 = vmul.f32 %v2030_v30, %v1153_v49  ;;  %vm1203_vm4 = vcmp.eq.f32.partialorder %v1202_v57, 8.507059e+37  ;;  %v1173_v12 = vsel %vm2078_vm5, %v2024_v21, %v1169_v59  ;;  %vm1185_vm8 = vweird.f32 %v2034_v33 }
 0x31c   :  { %v1182_v6 = vmul.f32 %v2034_v33, %v1181_v55  ;;  %vm1156_vm9 = vweird.f32 %v2019_v3  ;;  %v1160_v21 = vand.u32 2147483647, %v2019_v3  ;;  %v1190_v26 = vand.u32 2147483648, %v2009_v51  ;;  %vm1186_vm12 = vmor %vm1184_vm11, %vm1185_vm8 }
 0x31d   :  { %v1155_v16 = vadd.f32 %v2030_v30, %v1154_v63  ;;  %vm1158_vm10 = vmor %vm1156_vm9, %vm1157_vm6  ;;  %v1188_v28 = vand.u32 2147483647, %v2009_v51  ;;  %v1163_v35 = vor.u32 1.1754944e-38, %v1162_v22  ;;  %vm1212_vm5 = vweird.f32 %v2065_v61  ;;  %v1311_v63 = vld [vmem:[#allocation10 + $0x60] sm:$0xff] }
 0x31e   :  { %v1523_v37 = vpop.eup %1522  ;;  %v1183_v24 = vadd.f32 %v2034_v33, %v1182_v6  ;;  %vm1161_vm13 = vcmp.eq.f32.partialorder %v1160_v21, 8.507059e+37  ;;  %v1305_v6 = vld [vmem:[#allocation10 + $0x30] sm:$0xff]  ;;  %1528 = vrcp.f32 %v1994_v4  ;;  %vm1002_vm9 = vweird.f32 %v1994_v4 }
 0x31f   :  { %v1194_v44 = vmul.f32 %v1523_v37, %v761_v25  ;;  %vm1199_vm14 = vweird.f32 %v1523_v37  ;;  %v2061_v58 = vpop.eup %1524  ;;  %v1178_v25 = vsel %vm1175_vm7, %v1177_v10, %v1173_v12  ;;  %v1159_v29 = vsel %vm1158_vm10, %v2030_v30, %v1155_v16  ;;  %v1300_v12 = vld [vmem:[#allocation10 + $0x8] sm:$0xff]  ;;  %v1299_v16 = vld [vmem:[#allocation10] sm:$0xff] }
 0x320   :  { %vm1200_vm3 = vmor %vm1198_vm1, %vm1199_vm14  ;;  %v1096_v2 = vmul.f32 %v2061_v58, %v2032_v32  ;;  %v1233_v27 = vmul.f32 %v1178_v25, %v962_v17  ;;  %v1527_v31 = vpop.eup %1526  ;;  %v1187_v3 = vsel %vm1186_vm12, %v2034_v33, %v1183_v24  ;;  %v1164_v40 = vsel %vm1161_vm13, %v1163_v35, %v1159_v29 }
 0x321   :  { %v1195_v50 = vsub.f32 1.0, %v1194_v44  ;;  %v1208_v42 = vmul.f32 %v1527_v31, %v2065_v61  ;;  %vm1189_vm14 = vcmp.eq.f32.partialorder %v1188_v28, 8.507059e+37  ;;  %vm1101_vm15 = vweird.f32 %v2061_v58  ;;  %v965_v46 = vpop.f32.mrf.mxu2 }
 0x322   :  { %v1097_v23 = vsub.f32 1.0, %v1096_v2  ;;  %v1106_v44 = vand.u32 2147483648, %v2032_v32  ;;  %vm1100_vm1 = vweird.f32 %v2032_v32  ;;  %v1216_v32 = vand.u32 2147483647, %v2065_v61  ;;  %v1306_v2 = vld [vmem:[#allocation10 + $0x38] sm:$0xff] }
 0x323   :  { %v1196_v56 = vmul.f32 %v1523_v37, %v1195_v50  ;;  %v1209_v33 = vsub.f32 1.0, %v1208_v42  ;;  %vm1102_vm2 = vmor %vm1100_vm1, %vm1101_vm15  ;;  %1530 = vrcp.f32 %v1996_v5  ;;  %v1008_v29 = vand.u32 2147483648, %v1994_v4 }
 0x324   :  { %727 = vadd.xlane.f32.xlu0 %v726_v54  ;;  %v933_v60 = vpop.f32.mrf.mxu1  ;;  %v1098_v36 = vmul.f32 %v2061_v58, %v1097_v23  ;;  %v1107_v52 = vor.u32 1.1754944e-38, %v1106_v44  ;;  %vm1217_vm7 = vcmp.eq.f32.partialorder %v1216_v32, 8.507059e+37  ;;  %1532 = vrcp.f32 %v2000_v8 }
 0x325   :  { %v1231_v62 = vmul.f32 %v1150_v38, %v933_v60  ;;  %v1197_v47 = vadd.f32 %v1523_v37, %v1196_v56  ;;  %v1210_v53 = vmul.f32 %v1527_v31, %v1209_v33  ;;  %v1218_v56 = vand.u32 2147483648, %v2065_v61  ;;  %v1309_v61 = vld [vmem:[#allocation10 + $0x50] sm:$0xff] }
 0x326   :  { %v1099_v43 = vadd.f32 %v2061_v58, %v1098_v36  ;;  %v1020_v44 = vand.u32 2147483647, %v1996_v5  ;;  %vm1016_vm13 = vweird.f32 %v1996_v5  ;;  %vm1289_vm15 = vcmask 523264  }
 0x327   :  { %1261 = vrot.lane.b32.xlu1 %v1231_v62, %s1699_s23  ;;  %v1201_v7 = vsel %vm1200_vm3, %v1523_v37, %v1197_v47  ;;  %v1191_v37 = vor.u32 1.1754944e-38, %v1190_v26  ;;  %vm1105_vm3 = vcmp.eq.f32.partialorder %v1104_v48, 8.507059e+37  ;;  %v1211_v55 = vadd.f32 %v1527_v31, %v1210_v53  ;;  %v1313_v62 = vld [vmem:[#allocation10 + $0x70] sm:$0xff]  ;;  %v1312_v47 = vld [vmem:[#allocation10 + $0x68] sm:$0xff] }
 0x328   :  { %v1206_v11 = vsel %vm1203_vm4, %v1205_v45, %v1201_v7  ;;  %v1103_v50 = vsel %vm1102_vm2, %v2061_v58, %v1099_v43  ;;  %vm1213_vm4 = vweird.f32 %v1527_v31  ;;  %v994_v58 = vpop.f32.mrf.mxu3  ;;  %v1219_v59 = vor.u32 1.1754944e-38, %v1218_v56  ;;  %v1307_v45 = vld [vmem:[#allocation10 + $0x40] sm:$0xff]  ;;  %v1304_v7 = vld [vmem:[#allocation10 + $0x28] sm:$0xff] }
 0x329   :  { %v1235_v15 = vmul.f32 %v1206_v11, %v991_v13  ;;  %v1192_v30 = vsel %vm1189_vm14, %v1191_v37, %v1187_v3  ;;  %v1108_v54 = vsel %vm1105_vm3, %v1107_v52, %v1103_v50  ;;  %vm1214_vm6 = vmor %vm1212_vm5, %vm1213_vm4  ;;  %v1302_v13 = vld [vmem:[#allocation10 + $0x18] sm:$0xff]  ;;  %v1301_v11 = vld [vmem:[#allocation10 + $0x10] sm:$0xff]  ;;  %v1009_v37 = vor.u32 1.1754944e-38, %v1008_v29 }
 0x32a   :  { %v1234_v49 = vmul.f32 %v1192_v30, %v965_v46  ;;  %v1228_v41 = vmul.f32 %v1108_v54, %v2044_v39  ;;  %v1215_v57 = vsel %vm1214_vm6, %v1527_v31, %v1211_v55  ;;  %v1314_v39 = vld [vmem:[#allocation10 + $0x78] sm:$0xff]  ;;  %v1006_v31 = vand.u32 2147483647, %v1994_v4 }
 0x32b   :  { %1277 = vrot.lane.b32.xlu2 %v1235_v15, %s1697_s4  ;;  %v1220_v60 = vsel %vm1217_vm7, %v1219_v59, %v1215_v57  ;;  %1319 = vmatpush.msra.mxu0 %v1314_v39  ;;  %v1529_v15 = vpop.eup %1528  ;;  %vm1021_vm1 = vcmp.eq.f32.partialorder %v1020_v44, 8.507059e+37  ;;  %vm1294_vm2 = vcmask 785408   ;;  %v1036_v57 = vand.u32 2147483648, %v2000_v8 }
 0x32c   :  { %v936_v20 = vpop.f32.mrf.mxu1  ;;  %v1236_v38 = vmul.f32 %v1220_v60, %v994_v58  ;;  %v998_v17 = vmul.f32 %v1529_v15, %v1994_v4  ;;  %v1531_v22 = vpop.eup %1530  ;;  %vm1003_vm8 = vweird.f32 %v1529_v15  ;;  %vm1007_vm11 = vcmp.eq.f32.partialorder %v1006_v31, 8.507059e+37 }
 0x32d   :  { %v1232_v51 = vmul.f32 %v1164_v40, %v936_v20  ;;  %1320 = vmatpush.msra.mxu0 %v1313_v62  ;;  %v1012_v24 = vmul.f32 %v1531_v22, %v1996_v5  ;;  %v1533_v25 = vpop.eup %1532  ;;  %vm1004_vm10 = vmor %vm1002_vm9, %vm1003_vm8  ;;  %vm1017_vm12 = vweird.f32 %v1531_v22  ;;  %v1022_v4 = vand.u32 2147483648, %v1996_v5 }
 0x32e   :  { %v999_v10 = vsub.f32 1.0, %v998_v17  ;;  %v1026_v20 = vmul.f32 %v1533_v25, %v2000_v8  ;;  %vm2134_vm14 = vmor %vm1016_vm13, %vm1017_vm12  ;;  %vm1031_vm3 = vweird.f32 %v1533_v25  ;;  %vm1030_vm4 = vweird.f32 %v2000_v8 }
 0x32f   :  { %1273 = vrot.lane.b32.xlu1 %v1233_v27, %s1697_s4  ;;  %1321 = vmatpush.msra.mxu0 %v1312_v47  ;;  %v1013_v26 = vsub.f32 1.0, %v1012_v24  ;;  %v1034_v59 = vand.u32 2147483647, %v2000_v8  ;;  %vm1032_vm5 = vmor %vm1030_vm4, %vm1031_vm3 }
 0x330   :  { %v1000_v21 = vmul.f32 %v1529_v15, %v999_v10  ;;  %v1027_v42 = vsub.f32 1.0, %v1026_v20 }
 0x331   :  { %1322 = vmatpush.msra.mxu0 %v1311_v63  ;;  %v1014_v36 = vmul.f32 %v1531_v22, %v1013_v26  ;;  %v1037_v63 = vor.u32 1.1754944e-38, %v1036_v57  ;;  %vm1035_vm6 = vcmp.eq.f32.partialorder %v1034_v59, 8.507059e+37  ;;  %v1471_v26 = vld [vmem:[%s2176_s5] ss:$0 sm:$0xff] }
 0x332   :  { %v1001_v27 = vadd.f32 %v1529_v15, %v1000_v21  ;;  %v1028_v33 = vmul.f32 %v1533_v25, %v1027_v42 }
 0x333   :  { %1263 = vrot.lane.b32.xlu2 %v1232_v51, %s1699_s23  ;;  %1323 = vmatpush.msra.mxu0 %v1310_v0  ;;  %v1015_v30 = vadd.f32 %v1531_v22, %v1014_v36 }
 0x334   :  { %v1005_v3 = vsel %vm1004_vm10, %v1529_v15, %v1001_v27  ;;  %v1029_v56 = vadd.f32 %v1533_v25, %v1028_v33 }
 0x335   :  { %1324 = vmatpush.msra.mxu0 %v1309_v61  ;;  %v1010_v51 = vsel %vm1007_vm11, %v1009_v37, %v1005_v3  ;;  %v1019_v53 = vsel %vm2134_vm14, %v1531_v22, %v1015_v30 }
 0x336   :  { %v1033_v39 = vsel %vm1032_vm5, %v1533_v25, %v1029_v56 }
 0x337   :  { %1275 = vrot.lane.b32.xlu1 %v1234_v49, %s1697_s4  ;;  %1325 = vmatpush.msra.mxu0 %v1308_v1  ;;  %v1221_v49 = vmul.f32 %v1010_v51, %v1998_v18  ;;  %v1038_v1 = vsel %vm1035_vm6, %v1037_v63, %v1033_v39 }
 0x339   :  { %1326 = vmatpush.msra.mxu0 %v1307_v45 }
 0x33b   :  { %1327 = vmatpush.msra.mxu0 %v1306_v2 }
 0x33d   :  { %1328 = vmatpush.msra.mxu0 %v1305_v6 }
 0x33f   :  { %1247 = vrot.lane.b32.xlu1 %v1228_v41, %s1698_s22  ;;  %1329 = vmatpush.msra.mxu0 %v1304_v7  ;;  %v1023_v41 = vor.u32 1.1754944e-38, %v1022_v4 }
 0x341   :  { %1330 = vmatpush.msra.mxu0 %v1303_v9  ;;  %v1024_v58 = vsel %vm1021_vm1, %v1023_v41, %v1019_v53 }
 0x343   :  { %1331 = vmatpush.msra.mxu0 %v1302_v13 }
 0x345   :  { %1332 = vmatpush.msra.mxu0 %v1301_v11 }
 0x347   :  { %1279 = vrot.lane.b32.xlu1 %v1236_v38, %s1697_s4  ;;  %1333 = vmatpush.msra.mxu0 %v1300_v12  ;;  %v1222_v38 = vmul.f32 %v1024_v58, %v2004_v14  ;;  %v1223_v14 = vmul.f32 %v1038_v1, %v2036_v34 }
 0x349   :  { %1334 = vmatpush.msra.mxu0 %v1299_v16 }
 0x35f   :  { %v1468_v28 = vpop.permute.xlu2 %1467 }
 0x360   :  { %v1469_v43 = vunpack.i.l.bf16 %v1468_v28  ;;  %v1470_v60 = vunpack.i.h.bf16 %v1468_v28 }
 0x362   :  { %v1285_v54 = vsel %vm347_vm0, %v1221_v49, %v1469_v43  ;;  %v1286_v0 = vsel %vm347_vm0, %v1222_v38, %v1470_v60 }
 0x367   :  { %v1260_v48 = vpop.permute.xlu2 %1259 }
 0x368   :  { %v1291_v61 = vsel %vm1289_vm15, %v1286_v0, %v1260_v48 }
 0x36c   :  { %v1258_v23 = vpop.permute.xlu0 %1257 }
 0x36d   :  { %v1290_v5 = vsel %vm1289_vm15, %v1285_v54, %v1258_v23 }
 0x375   :  { %v1246_v62 = vpop.permute.xlu2 %1245 }
 0x376   :  { %v1287_v9 = vsel %vm347_vm0, %v1223_v14, %v1246_v62 }
 0x385   :  { %v1278_v13 = vpop.permute.xlu2 %1277 }
 0x38d   :  { %v1264_v23 = vpop.permute.xlu2 %1263 }
 0x397   :  { %v2127_v35 = vpop.xlane.xlu0 %727 }
 0x398   :  { %1534 = vrcp.f32 %v2127_v35  ;;  %v1050_v8 = vand.u32 2147483648, %v2127_v35  ;;  %vm1044_vm8 = vweird.f32 %v2127_v35  ;;  %v1048_v7 = vand.u32 2147483647, %v2127_v35 }
 0x399   :  { %v1262_v40 = vpop.permute.xlu1 %1261 }
 0x39a   :  { %v1051_v12 = vor.u32 1.1754944e-38, %v1050_v8  ;;  %v1292_v15 = vsel %vm1289_vm15, %v1287_v9, %v1262_v40  ;;  %vm1049_vm10 = vcmp.eq.f32.partialorder %v1048_v7, 8.507059e+37 }
 0x39b   :  { %v1297_v10 = vsel %vm1294_vm2, %v1292_v15, %v1278_v13 }
 0x39e   :  { %v1535_v46 = vpop.eup %1534 }
 0x39f   :  { %v1040_v52 = vmul.f32 %v1535_v46, %v2127_v35  ;;  %vm1045_vm7 = vweird.f32 %v1535_v46 }
 0x3a0   :  { %vm1046_vm9 = vmor %vm1044_vm8, %vm1045_vm7 }
 0x3a1   :  { %v1274_v55 = vpop.permute.xlu1 %1273  ;;  %v1041_v18 = vsub.f32 1.0, %v1040_v52 }
 0x3a2   :  { %v1295_v32 = vsel %vm1294_vm2, %v1290_v5, %v1274_v55 }
 0x3a3   :  { %1335 = vmatmul.f32.vlgmr.msra.gmra.mxu0 %v1295_v32  ;;  %v1042_v47 = vmul.f32 %v1535_v46, %v1041_v18 }
 0x3a5   :  { %v1043_v2 = vadd.f32 %v1535_v46, %v1042_v47 }
 0x3a7   :  { %v1047_v11 = vsel %vm1046_vm9, %v1535_v46, %v1043_v2 }
 0x3a8   :  { %v1052_v16 = vsel %vm1049_vm10, %v1051_v12, %v1047_v11 }
 0x3a9   :  { %v1276_v45 = vpop.permute.xlu1 %1275  ;;  %v1224_v34 = vmul.f32 %v1052_v16, %v2006_v19 }
 0x3aa   :  { %v1296_v6 = vsel %vm1294_vm2, %v1291_v61, %v1276_v45 }
 0x3ab   :  { %1338 = vmatmul.f32.gmra.mxu0 %v1296_v6 }
 0x3b1   :  { %v1248_v17 = vpop.permute.xlu1 %1247 }
 0x3b2   :  { %v1288_v22 = vsel %vm347_vm0, %v1224_v34, %v1248_v17 }
 0x3b3   :  { %1341 = vmatmul.f32.gmra.mxu0 %v1297_v10  ;;  %v1293_v21 = vsel %vm1289_vm15, %v1288_v22, %v1264_v23 }
 0x3b9   :  { %v1280_v24 = vpop.permute.xlu1 %1279 }
 0x3ba   :  { %v1298_v25 = vsel %vm1294_vm2, %v1293_v21, %v1280_v24 }
 0x3bb   :  { %1344 = vmatmul.f32.gmra.mxu0 %v1298_v25 }
 0x420   :  { %v1336_v27 = vpop.f32.mrf.mxu0 }
 0x421   :  { %v1337_v28 = vadd.f32 %v1471_v26, %v1336_v27 }
 0x423   :  { %1348 = vst [vmem:[#allocation11] sm:$0xff] %v1337_v28 }
 0x428   :  { %v1339_v29 = vpop.f32.mrf.mxu0 }
 0x429   :  { %v1340_v31 = vadd.f32 %v1471_v26, %v1339_v29 }
 0x42b   :  { %1349 = vst [vmem:[#allocation11 + $0x8] sm:$0xff] %v1340_v31 }
 0x430   :  { %v1342_v19 = vpop.f32.mrf.mxu0 }
 0x431   :  { %v1343_v20 = vadd.f32 %v1471_v26, %v1342_v19 }
 0x433   :  { %1350 = vst [vmem:[#allocation11 + $0x10] sm:$0xff] %v1343_v20 }
 0x438   :  { %v1345_v35 = vpop.f32.mrf.mxu0 }
 0x439   :  { %v1346_v36 = vadd.f32 %v1471_v26, %v1345_v35 }
 0x43b   :  { %1351 = vst [vmem:[#allocation11 + $0x18] sm:$0xff] %v1346_v36 }
 0x43c   :  { %1364 = dma.vmem_to_hbm [thread:$0]  %s1357_s27, 512, %s1359_s8, [#allocation4], %s1689_s29, %s1689_s29, %s1690_s30  }
 0x43d   :  { %1686 = dma.done.wait [#allocation4], 512  }
 0x43e   :  { %1687 = vsyncadd [#allocation4], 4294966784 }
 0x43f   :  { %1369 = vsyncpa [#allocation3], 1 }
 0x440   :  { %1370 = vsyncpa [#allocation6], 1 }
 0x441   :  { %1371 = vsyncpa [#allocation9], 1 }
 0x442   :  { %1372 = vsyncpa [#allocation4], 1 }

</bundles_post_ra>
